<compile_context>
chip_gen: v7x
topology: tpu7x:2x2x1
jax: 0.10.0
libtpu: 0.0.40
codegen_flags: <defaults>
</compile_context>

<pallas_src>
import functools

import jax
import jax.numpy as jnp
from jax.experimental import pallas as pl
from jax.experimental.pallas import tpu as pltpu


def _round_up(x, m):
    return (x + m - 1) // m * m


# --------------------------- fused decoder kernel --------------------------- #

def _make_decoder_kernel(*, num_layers, B, T, E, H, V, VPAD):
    """Fused decoder kernel for static (num_layers, B, T, E, H, V, VPAD)."""
    T1 = T + 1
    f32 = jnp.float32
    bf16 = jnp.bfloat16

    def kernel(*refs):
        # ---- unpack refs ----
        tok_ref, img_ref, enc_w_ref, enc_b_ref, embed_ref = refs[:5]
        w_ih0_ref, w_hh0_ref, b0_ref = refs[5:8]
        upper = refs[8:8 + 2 * (num_layers - 1)]        # (w_cat, b) per upper layer
        hs = 8 + 2 * (num_layers - 1)
        lin1_w_ref, lin1_b_ref, lin2_w_ref, lin2_b_ref = refs[hs:hs + 4]
        out_ref = refs[hs + 4]                           # (T1*B, VPAD) f32

        # ---- encoder projection (the `-` sign is folded into enc_w / enc_b) ----
        features = (jnp.dot(img_ref[...], enc_w_ref[...], preferred_element_type=f32)
                    + enc_b_ref[...])                    # (B, E) f32

        # ---- embedding gather as one one-hot MXU matmul (time-major rows t*B + b) ----
        tok = tok_ref[...]                               # (B*T, 1) int32
        vocab_iota = jax.lax.broadcasted_iota(jnp.int32, (B * T, V), 1)
        one_hot = (vocab_iota == tok).astype(bf16)       # (B*T, V)
        emb_rows = jnp.dot(one_hot, embed_ref[...],
                           preferred_element_type=f32)   # (B*T, E) f32

        # ---- hoist ALL layer-0 input projections out of the recurrence ----
        x_all = jnp.concatenate([features, emb_rows], axis=0).astype(bf16)  # (B*T1, E)
        gx0 = (jnp.dot(x_all, w_ih0_ref[...], preferred_element_type=f32)
               + b0_ref[...])                            # (B*T1, 4H) f32 (bias folded)

        # ---- stacked LSTM, fully unrolled, state in f32 registers ----
        h = [jnp.zeros((B, H), f32) for _ in range(num_layers)]
        c = [jnp.zeros((B, H), f32) for _ in range(num_layers)]
        h_top = []

        def cell(gates, c_prev):
            # two full-width EUP pushes instead of four 32-lane ones
            sig = jax.nn.sigmoid(gates)
            th = jnp.tanh(gates)
            i_g = sig[:, 0 * H:1 * H]
            f_g = sig[:, 1 * H:2 * H]
            g_g = th[:, 2 * H:3 * H]
            o_g = sig[:, 3 * H:4 * H]
            c_new = f_g * c_prev + i_g * g_g
            h_new = o_g * jnp.tanh(c_new)
            return h_new, c_new

        for t in range(T1):
            # layer 0: only the recurrent matmul is on the serial chain
            gates0 = (gx0[t * B:(t + 1) * B, :]
                      + jnp.dot(h[0].astype(bf16), w_hh0_ref[...],
                                preferred_element_type=f32))
            h[0], c[0] = cell(gates0, c[0])
            inp = h[0]
            # upper layers: one fused concat-weights matmul per cell
            for l in range(1, num_layers):
                w_cat_ref, b_ref = upper[2 * (l - 1):2 * l]
                cat = jnp.concatenate([inp, h[l]], axis=-1).astype(bf16)   # (B, 2H)
                gates = (jnp.dot(cat, w_cat_ref[...], preferred_element_type=f32)
                         + b_ref[...])
                h[l], c[l] = cell(gates, c[l])
                inp = h[l]
            h_top.append(h[num_layers - 1])

        # ---- fused 2-layer head over the whole sequence; lane-dense output ----
        hid = jnp.concatenate(h_top, axis=0).astype(bf16)                  # (T1*B, H)
        z = (jnp.dot(hid, lin1_w_ref[...], preferred_element_type=f32)
             + lin1_b_ref[...])
        logits = (jnp.dot(z.astype(bf16), lin2_w_ref[...], preferred_element_type=f32)
                  + lin2_b_ref[...])                                       # (T1*B, VPAD)
        out_ref[...] = logits

    return kernel


# ------------------------------- parameters -------------------------------- #

def init_params(key, *, img_feat, embed_size, hidden_size, vocab_size, num_layers,
                padding_idx=0):
    """Raw f32 parameters (PyTorch layouts pre-transposed to (in, out))."""
    keys = jax.random.split(key, 8 + 4 * num_layers)
    k = iter(keys)
    scale = 0.1
    params = {
        # synthetic encoder: flatten -> Linear(img_feat, embed_size)
        "enc_w": scale * jax.random.normal(next(k), (img_feat, embed_size), jnp.float32),
        "enc_b": scale * jax.random.normal(next(k), (embed_size,), jnp.float32),
        # embedding table (padding row zeroed, like nn.Embedding(padding_idx=...))
        "embed": scale * jax.random.normal(next(k), (vocab_size, embed_size), jnp.float32),
        # output head: Linear(H, 2H) -> Linear(2H, V)  (no activation in between)
        "lin1_w": scale * jax.random.normal(next(k), (hidden_size, 2 * hidden_size), jnp.float32),
        "lin1_b": scale * jax.random.normal(next(k), (2 * hidden_size,), jnp.float32),
        "lin2_w": scale * jax.random.normal(next(k), (2 * hidden_size, vocab_size), jnp.float32),
        "lin2_b": scale * jax.random.normal(next(k), (vocab_size,), jnp.float32),
    }
    params["embed"] = params["embed"].at[padding_idx].set(0.0)

    # LSTM weights: (in, 4H) / (H, 4H); gate order i,f,g,o (PyTorch).
    w_ih, b_ih, w_hh, b_hh = [], [], [], []
    for layer in range(num_layers):
        in_dim = embed_size if layer == 0 else hidden_size
        w_ih.append(scale * jax.random.normal(next(k), (in_dim, 4 * hidden_size), jnp.float32))
        b_ih.append(scale * jax.random.normal(next(k), (4 * hidden_size,), jnp.float32))
        w_hh.append(scale * jax.random.normal(next(k), (hidden_size, 4 * hidden_size), jnp.float32))
        b_hh.append(scale * jax.random.normal(next(k), (4 * hidden_size,), jnp.float32))
    params["w_ih"], params["b_ih"] = w_ih, b_ih
    params["w_hh"], params["b_hh"] = w_hh, b_hh
    return params


def prepare_params(params, *, num_layers, lane=128):
    """One-time prep: bf16 matmul weights, folded sign/biases, concat LSTM weights,
    lane-padded vocab head."""
    V = params["lin2_w"].shape[1]
    VPAD = _round_up(V, lane)
    kp = {
        # fold the `-self.encoder(img)` sign flip into the encoder weights
        "enc_w": (-params["enc_w"]).astype(jnp.bfloat16),
        "enc_b": (-params["enc_b"]).reshape(1, -1).astype(jnp.float32),
        "embed": params["embed"].astype(jnp.bfloat16),
        "lin1_w": params["lin1_w"].astype(jnp.bfloat16),
        "lin1_b": params["lin1_b"].reshape(1, -1).astype(jnp.float32),
        "lin2_w": jnp.pad(params["lin2_w"], ((0, 0), (0, VPAD - V))).astype(jnp.bfloat16),
        "lin2_b": jnp.pad(params["lin2_b"], (0, VPAD - V)).reshape(1, -1).astype(jnp.float32),
        # layer 0 keeps split weights (x-projection is hoisted out of the loop)
        "w_ih0": params["w_ih"][0].astype(jnp.bfloat16),
        "w_hh0": params["w_hh"][0].astype(jnp.bfloat16),
        "b0": (params["b_ih"][0] + params["b_hh"][0]).reshape(1, -1).astype(jnp.float32),
        # upper layers: concat [w_ih; w_hh] -> one matmul per cell
        "w_cat": [jnp.concatenate([params["w_ih"][l], params["w_hh"][l]],
                                  axis=0).astype(jnp.bfloat16)
                  for l in range(1, num_layers)],
        "b_up": [(params["b_ih"][l] + params["b_hh"][l]).reshape(1, -1).astype(jnp.float32)
                 for l in range(1, num_layers)],
    }
    return kp


# --------------------------------- forward --------------------------------- #

@functools.partial(jax.jit, static_argnames=("num_layers", "vocab_size"))
def decoder_forward(kparams, img, translations, *, num_layers, vocab_size):
    B = img.shape[0]
    T = translations.shape[1]
    T1 = T + 1
    E = kparams["enc_w"].shape[1]
    H = kparams["w_hh0"].shape[0]
    V = kparams["embed"].shape[0]
    VPAD = kparams["lin2_w"].shape[1]

    img_flat = img.reshape(B, -1).astype(jnp.bfloat16)
    # time-major token ids: row t*B + b == translations[b, t]
    tok_tb = translations.T.reshape(B * T, 1).astype(jnp.int32)

    upper_flat = []
    for l in range(num_layers - 1):
        upper_flat += [kparams["w_cat"][l], kparams["b_up"][l]]

    n_inputs = 8 + 2 * (num_layers - 1) + 4
    in_specs = [pl.BlockSpec(memory_space=pltpu.MemorySpace.VMEM)
                for _ in range(n_inputs)]

    kernel = _make_decoder_kernel(num_layers=num_layers, B=B, T=T, E=E, H=H,
                                  V=V, VPAD=VPAD)

    out_tm = pl.pallas_call(
        kernel,
        out_shape=jax.ShapeDtypeStruct((T1 * B, VPAD), jnp.float32),
        in_specs=in_specs,
        out_specs=pl.BlockSpec(memory_space=pltpu.MemorySpace.VMEM),
    )(tok_tb, img_flat,
      kparams["enc_w"], kparams["enc_b"], kparams["embed"],
      kparams["w_ih0"], kparams["w_hh0"], kparams["b0"],
      *upper_flat,
      kparams["lin1_w"], kparams["lin1_b"], kparams["lin2_w"], kparams["lin2_b"])

    # time-major (T1*B, VPAD) -> (B, T1, V) in the wrapper (tiny XLA transpose + slice)
    out = out_tm.reshape(T1, B, VPAD).transpose(1, 0, 2)
    return out[..., :vocab_size]


# ----------------------------------- main ----------------------------------- #

if __name__ == "__main__":
    # Small deterministic shapes.
    B, C, HH, WW = 2, 4, 16, 16
    T = 8
    embed_size, hidden_size, vocab_size, num_layers = 32, 32, 64, 2

    key = jax.random.PRNGKey(0)
    k_params, k_img, k_tok = jax.random.split(key, 3)

    raw = init_params(
        k_params,
        img_feat=C * HH * WW,
        embed_size=embed_size,
        hidden_size=hidden_size,
        vocab_size=vocab_size,
        num_layers=num_layers,
        padding_idx=0,
    )
    kparams = prepare_params(raw, num_layers=num_layers)

    img = jax.random.normal(k_img, (B, C, HH, WW), jnp.float32)           # NCHW
    translations = jax.random.randint(k_tok, (B, T), 0, vocab_size, jnp.int32)

    out = decoder_forward(kparams, img, translations,
                          num_layers=num_layers, vocab_size=vocab_size)
    out = jax.block_until_ready(out)

    assert out.shape == (B, T + 1, vocab_size), out.shape
    assert jnp.all(jnp.isfinite(out))
    print("KERNEL_OK")
</pallas_src>

<mosaic_0001>
module attributes {stable_mosaic.version = 11 : i64} {
  func.func @kernel(%arg0: memref<16x1xi32, #tpu.memory_space<vmem>>, %arg1: memref<2x1024xbf16, #tpu.memory_space<vmem>>, %arg2: memref<1024x32xbf16, #tpu.memory_space<vmem>>, %arg3: memref<1x32xf32, #tpu.memory_space<vmem>>, %arg4: memref<64x32xbf16, #tpu.memory_space<vmem>>, %arg5: memref<32x128xbf16, #tpu.memory_space<vmem>>, %arg6: memref<32x128xbf16, #tpu.memory_space<vmem>>, %arg7: memref<1x128xf32, #tpu.memory_space<vmem>>, %arg8: memref<64x128xbf16, #tpu.memory_space<vmem>>, %arg9: memref<1x128xf32, #tpu.memory_space<vmem>>, %arg10: memref<32x64xbf16, #tpu.memory_space<vmem>>, %arg11: memref<1x64xf32, #tpu.memory_space<vmem>>, %arg12: memref<64x128xbf16, #tpu.memory_space<vmem>>, %arg13: memref<1x128xf32, #tpu.memory_space<vmem>>, %arg14: memref<18x128xf32, #tpu.memory_space<vmem>>) attributes {dimension_semantics = [], scalar_prefetch = 0 : i64, scratch_operands = 0 : i64, tpu.core_type = #tpu.core_type<tc>} {
    %c0 = arith.constant 0 : index
    %c0_0 = arith.constant 0 : index
    %0 = vector.load %arg1[%c0, %c0_0] : memref<2x1024xbf16, #tpu.memory_space<vmem>>, vector<2x1024xbf16>
    %c0_1 = arith.constant 0 : index
    %c0_2 = arith.constant 0 : index
    %1 = vector.load %arg2[%c0_1, %c0_2] : memref<1024x32xbf16, #tpu.memory_space<vmem>>, vector<1024x32xbf16>
    %cst = arith.constant dense<0.000000e+00> : vector<2x32xf32>
    %2 = tpu.matmul %0, %1, %cst {dimension_numbers = #tpu.dot_dimension_numbers<[1], [0], [0], [1], [0, 0, 1, 1], [], []>} : vector<2x1024xbf16>, vector<1024x32xbf16>, vector<2x32xf32> -> vector<2x32xf32>
    %c0_3 = arith.constant 0 : index
    %c0_4 = arith.constant 0 : index
    %3 = vector.load %arg3[%c0_3, %c0_4] : memref<1x32xf32, #tpu.memory_space<vmem>>, vector<1x32xf32>
    %4 = vector.broadcast %3 : vector<1x32xf32> to vector<2x32xf32>
    %5 = arith.addf %2, %4 : vector<2x32xf32>
    %c0_5 = arith.constant 0 : index
    %c0_6 = arith.constant 0 : index
    %6 = vector.load %arg0[%c0_5, %c0_6] : memref<16x1xi32, #tpu.memory_space<vmem>>, vector<16x1xi32>
    %7 = tpu.iota {dimensions = array<i32: 1>} : vector<16x64xi32>
    %8 = vector.broadcast %6 : vector<16x1xi32> to vector<16x64xi32>
    %9 = arith.cmpi eq, %7, %8 : vector<16x64xi32>
    %10 = arith.extui %9 : vector<16x64xi1> to vector<16x64xi32>
    %11 = arith.sitofp %10 : vector<16x64xi32> to vector<16x64xf32>
    %12 = arith.truncf %11 : vector<16x64xf32> to vector<16x64xbf16>
    %c0_7 = arith.constant 0 : index
    %c0_8 = arith.constant 0 : index
    %13 = vector.load %arg4[%c0_7, %c0_8] : memref<64x32xbf16, #tpu.memory_space<vmem>>, vector<64x32xbf16>
    %cst_9 = arith.constant dense<0.000000e+00> : vector<16x32xf32>
    %14 = tpu.matmul %12, %13, %cst_9 {dimension_numbers = #tpu.dot_dimension_numbers<[1], [0], [0], [1], [0, 0, 1, 1], [], []>} : vector<16x64xbf16>, vector<64x32xbf16>, vector<16x32xf32> -> vector<16x32xf32>
    %15 = tpu.concatenate %5, %14 in 0 : vector<2x32xf32>, vector<16x32xf32> -> vector<18x32xf32>
    %16 = arith.truncf %15 : vector<18x32xf32> to vector<18x32xbf16>
    %c0_10 = arith.constant 0 : index
    %c0_11 = arith.constant 0 : index
    %17 = vector.load %arg5[%c0_10, %c0_11] : memref<32x128xbf16, #tpu.memory_space<vmem>>, vector<32x128xbf16>
    %cst_12 = arith.constant dense<0.000000e+00> : vector<18x128xf32>
    %18 = tpu.matmul %16, %17, %cst_12 {dimension_numbers = #tpu.dot_dimension_numbers<[1], [0], [0], [1], [0, 0, 1, 1], [], []>} : vector<18x32xbf16>, vector<32x128xbf16>, vector<18x128xf32> -> vector<18x128xf32>
    %c0_13 = arith.constant 0 : index
    %c0_14 = arith.constant 0 : index
    %19 = vector.load %arg7[%c0_13, %c0_14] : memref<1x128xf32, #tpu.memory_space<vmem>>, vector<1x128xf32>
    %20 = vector.broadcast %19 : vector<1x128xf32> to vector<18x128xf32>
    %21 = arith.addf %18, %20 : vector<18x128xf32>
    %cst_15 = arith.constant 0.000000e+00 : f32
    %22 = vector.broadcast %cst_15 : f32 to vector<2x32xf32>
    %cst_16 = arith.constant 0.000000e+00 : f32
    %23 = vector.broadcast %cst_16 : f32 to vector<2x32xf32>
    %cst_17 = arith.constant 0.000000e+00 : f32
    %24 = vector.broadcast %cst_17 : f32 to vector<2x32xf32>
    %cst_18 = arith.constant 0.000000e+00 : f32
    %25 = vector.broadcast %cst_18 : f32 to vector<2x32xf32>
    %26 = vector.extract_strided_slice %21 {offsets = [0, 0], sizes = [2, 128], strides = [1, 1]} : vector<18x128xf32> to vector<2x128xf32>
    %27 = arith.truncf %22 : vector<2x32xf32> to vector<2x32xbf16>
    %c0_19 = arith.constant 0 : index
    %c0_20 = arith.constant 0 : index
    %28 = vector.load %arg6[%c0_19, %c0_20] : memref<32x128xbf16, #tpu.memory_space<vmem>>, vector<32x128xbf16>
    %cst_21 = arith.constant dense<0.000000e+00> : vector<2x128xf32>
    %29 = tpu.matmul %27, %28, %cst_21 {dimension_numbers = #tpu.dot_dimension_numbers<[1], [0], [0], [1], [0, 0, 1, 1], [], []>} : vector<2x32xbf16>, vector<32x128xbf16>, vector<2x128xf32> -> vector<2x128xf32>
    %30 = arith.addf %26, %29 : vector<2x128xf32>
    %31 = arith.negf %30 : vector<2x128xf32>
    %32 = math.exp %31 : vector<2x128xf32>
    %cst_22 = arith.constant 1.000000e+00 : f32
    %33 = vector.broadcast %cst_22 : f32 to vector<2x128xf32>
    %34 = arith.addf %33, %32 : vector<2x128xf32>
    %35 = arith.divf %33, %34 : vector<2x128xf32>
    %36 = math.tanh %30 : vector<2x128xf32>
    %37 = vector.extract_strided_slice %35 {offsets = [0, 0], sizes = [2, 32], strides = [1, 1]} : vector<2x128xf32> to vector<2x32xf32>
    %38 = vector.extract_strided_slice %35 {offsets = [0, 32], sizes = [2, 32], strides = [1, 1]} : vector<2x128xf32> to vector<2x32xf32>
    %39 = vector.extract_strided_slice %36 {offsets = [0, 64], sizes = [2, 32], strides = [1, 1]} : vector<2x128xf32> to vector<2x32xf32>
    %40 = vector.extract_strided_slice %35 {offsets = [0, 96], sizes = [2, 32], strides = [1, 1]} : vector<2x128xf32> to vector<2x32xf32>
    %41 = arith.mulf %38, %24 : vector<2x32xf32>
    %42 = arith.mulf %37, %39 : vector<2x32xf32>
    %43 = arith.addf %41, %42 : vector<2x32xf32>
    %44 = math.tanh %43 : vector<2x32xf32>
    %45 = arith.mulf %40, %44 : vector<2x32xf32>
    %46 = tpu.concatenate %45, %23 in 1 : vector<2x32xf32>, vector<2x32xf32> -> vector<2x64xf32>
    %47 = arith.truncf %46 : vector<2x64xf32> to vector<2x64xbf16>
    %c0_23 = arith.constant 0 : index
    %c0_24 = arith.constant 0 : index
    %48 = vector.load %arg8[%c0_23, %c0_24] : memref<64x128xbf16, #tpu.memory_space<vmem>>, vector<64x128xbf16>
    %cst_25 = arith.constant dense<0.000000e+00> : vector<2x128xf32>
    %49 = tpu.matmul %47, %48, %cst_25 {dimension_numbers = #tpu.dot_dimension_numbers<[1], [0], [0], [1], [0, 0, 1, 1], [], []>} : vector<2x64xbf16>, vector<64x128xbf16>, vector<2x128xf32> -> vector<2x128xf32>
    %c0_26 = arith.constant 0 : index
    %c0_27 = arith.constant 0 : index
    %50 = vector.load %arg9[%c0_26, %c0_27] : memref<1x128xf32, #tpu.memory_space<vmem>>, vector<1x128xf32>
    %51 = vector.broadcast %50 : vector<1x128xf32> to vector<2x128xf32>
    %52 = arith.addf %49, %51 : vector<2x128xf32>
    %53 = arith.negf %52 : vector<2x128xf32>
    %54 = math.exp %53 : vector<2x128xf32>
    %cst_28 = arith.constant 1.000000e+00 : f32
    %55 = vector.broadcast %cst_28 : f32 to vector<2x128xf32>
    %56 = arith.addf %55, %54 : vector<2x128xf32>
    %57 = arith.divf %55, %56 : vector<2x128xf32>
    %58 = math.tanh %52 : vector<2x128xf32>
    %59 = vector.extract_strided_slice %57 {offsets = [0, 0], sizes = [2, 32], strides = [1, 1]} : vector<2x128xf32> to vector<2x32xf32>
    %60 = vector.extract_strided_slice %57 {offsets = [0, 32], sizes = [2, 32], strides = [1, 1]} : vector<2x128xf32> to vector<2x32xf32>
    %61 = vector.extract_strided_slice %58 {offsets = [0, 64], sizes = [2, 32], strides = [1, 1]} : vector<2x128xf32> to vector<2x32xf32>
    %62 = vector.extract_strided_slice %57 {offsets = [0, 96], sizes = [2, 32], strides = [1, 1]} : vector<2x128xf32> to vector<2x32xf32>
    %63 = arith.mulf %60, %25 : vector<2x32xf32>
    %64 = arith.mulf %59, %61 : vector<2x32xf32>
    %65 = arith.addf %63, %64 : vector<2x32xf32>
    %66 = math.tanh %65 : vector<2x32xf32>
    %67 = arith.mulf %62, %66 : vector<2x32xf32>
    %68 = vector.extract_strided_slice %21 {offsets = [2, 0], sizes = [2, 128], strides = [1, 1]} : vector<18x128xf32> to vector<2x128xf32>
    %69 = arith.truncf %45 : vector<2x32xf32> to vector<2x32xbf16>
    %c0_29 = arith.constant 0 : index
    %c0_30 = arith.constant 0 : index
    %70 = vector.load %arg6[%c0_29, %c0_30] : memref<32x128xbf16, #tpu.memory_space<vmem>>, vector<32x128xbf16>
    %cst_31 = arith.constant dense<0.000000e+00> : vector<2x128xf32>
    %71 = tpu.matmul %69, %70, %cst_31 {dimension_numbers = #tpu.dot_dimension_numbers<[1], [0], [0], [1], [0, 0, 1, 1], [], []>} : vector<2x32xbf16>, vector<32x128xbf16>, vector<2x128xf32> -> vector<2x128xf32>
    %72 = arith.addf %68, %71 : vector<2x128xf32>
    %73 = arith.negf %72 : vector<2x128xf32>
    %74 = math.exp %73 : vector<2x128xf32>
    %cst_32 = arith.constant 1.000000e+00 : f32
    %75 = vector.broadcast %cst_32 : f32 to vector<2x128xf32>
    %76 = arith.addf %75, %74 : vector<2x128xf32>
    %77 = arith.divf %75, %76 : vector<2x128xf32>
    %78 = math.tanh %72 : vector<2x128xf32>
    %79 = vector.extract_strided_slice %77 {offsets = [0, 0], sizes = [2, 32], strides = [1, 1]} : vector<2x128xf32> to vector<2x32xf32>
    %80 = vector.extract_strided_slice %77 {offsets = [0, 32], sizes = [2, 32], strides = [1, 1]} : vector<2x128xf32> to vector<2x32xf32>
    %81 = vector.extract_strided_slice %78 {offsets = [0, 64], sizes = [2, 32], strides = [1, 1]} : vector<2x128xf32> to vector<2x32xf32>
    %82 = vector.extract_strided_slice %77 {offsets = [0, 96], sizes = [2, 32], strides = [1, 1]} : vector<2x128xf32> to vector<2x32xf32>
    %83 = arith.mulf %80, %43 : vector<2x32xf32>
    %84 = arith.mulf %79, %81 : vector<2x32xf32>
    %85 = arith.addf %83, %84 : vector<2x32xf32>
    %86 = math.tanh %85 : vector<2x32xf32>
    %87 = arith.mulf %82, %86 : vector<2x32xf32>
    %88 = tpu.concatenate %87, %67 in 1 : vector<2x32xf32>, vector<2x32xf32> -> vector<2x64xf32>
    %89 = arith.truncf %88 : vector<2x64xf32> to vector<2x64xbf16>
    %c0_33 = arith.constant 0 : index
    %c0_34 = arith.constant 0 : index
    %90 = vector.load %arg8[%c0_33, %c0_34] : memref<64x128xbf16, #tpu.memory_space<vmem>>, vector<64x128xbf16>
    %cst_35 = arith.constant dense<0.000000e+00> : vector<2x128xf32>
    %91 = tpu.matmul %89, %90, %cst_35 {dimension_numbers = #tpu.dot_dimension_numbers<[1], [0], [0], [1], [0, 0, 1, 1], [], []>} : vector<2x64xbf16>, vector<64x128xbf16>, vector<2x128xf32> -> vector<2x128xf32>
    %c0_36 = arith.constant 0 : index
    %c0_37 = arith.constant 0 : index
    %92 = vector.load %arg9[%c0_36, %c0_37] : memref<1x128xf32, #tpu.memory_space<vmem>>, vector<1x128xf32>
    %93 = vector.broadcast %92 : vector<1x128xf32> to vector<2x128xf32>
    %94 = arith.addf %91, %93 : vector<2x128xf32>
    %95 = arith.negf %94 : vector<2x128xf32>
    %96 = math.exp %95 : vector<2x128xf32>
    %cst_38 = arith.constant 1.000000e+00 : f32
    %97 = vector.broadcast %cst_38 : f32 to vector<2x128xf32>
    %98 = arith.addf %97, %96 : vector<2x128xf32>
    %99 = arith.divf %97, %98 : vector<2x128xf32>
    %100 = math.tanh %94 : vector<2x128xf32>
    %101 = vector.extract_strided_slice %99 {offsets = [0, 0], sizes = [2, 32], strides = [1, 1]} : vector<2x128xf32> to vector<2x32xf32>
    %102 = vector.extract_strided_slice %99 {offsets = [0, 32], sizes = [2, 32], strides = [1, 1]} : vector<2x128xf32> to vector<2x32xf32>
    %103 = vector.extract_strided_slice %100 {offsets = [0, 64], sizes = [2, 32], strides = [1, 1]} : vector<2x128xf32> to vector<2x32xf32>
    %104 = vector.extract_strided_slice %99 {offsets = [0, 96], sizes = [2, 32], strides = [1, 1]} : vector<2x128xf32> to vector<2x32xf32>
    %105 = arith.mulf %102, %65 : vector<2x32xf32>
    %106 = arith.mulf %101, %103 : vector<2x32xf32>
    %107 = arith.addf %105, %106 : vector<2x32xf32>
    %108 = math.tanh %107 : vector<2x32xf32>
    %109 = arith.mulf %104, %108 : vector<2x32xf32>
    %110 = vector.extract_strided_slice %21 {offsets = [4, 0], sizes = [2, 128], strides = [1, 1]} : vector<18x128xf32> to vector<2x128xf32>
    %111 = arith.truncf %87 : vector<2x32xf32> to vector<2x32xbf16>
    %c0_39 = arith.constant 0 : index
    %c0_40 = arith.constant 0 : index
    %112 = vector.load %arg6[%c0_39, %c0_40] : memref<32x128xbf16, #tpu.memory_space<vmem>>, vector<32x128xbf16>
    %cst_41 = arith.constant dense<0.000000e+00> : vector<2x128xf32>
    %113 = tpu.matmul %111, %112, %cst_41 {dimension_numbers = #tpu.dot_dimension_numbers<[1], [0], [0], [1], [0, 0, 1, 1], [], []>} : vector<2x32xbf16>, vector<32x128xbf16>, vector<2x128xf32> -> vector<2x128xf32>
    %114 = arith.addf %110, %113 : vector<2x128xf32>
    %115 = arith.negf %114 : vector<2x128xf32>
    %116 = math.exp %115 : vector<2x128xf32>
    %cst_42 = arith.constant 1.000000e+00 : f32
    %117 = vector.broadcast %cst_42 : f32 to vector<2x128xf32>
    %118 = arith.addf %117, %116 : vector<2x128xf32>
    %119 = arith.divf %117, %118 : vector<2x128xf32>
    %120 = math.tanh %114 : vector<2x128xf32>
    %121 = vector.extract_strided_slice %119 {offsets = [0, 0], sizes = [2, 32], strides = [1, 1]} : vector<2x128xf32> to vector<2x32xf32>
    %122 = vector.extract_strided_slice %119 {offsets = [0, 32], sizes = [2, 32], strides = [1, 1]} : vector<2x128xf32> to vector<2x32xf32>
    %123 = vector.extract_strided_slice %120 {offsets = [0, 64], sizes = [2, 32], strides = [1, 1]} : vector<2x128xf32> to vector<2x32xf32>
    %124 = vector.extract_strided_slice %119 {offsets = [0, 96], sizes = [2, 32], strides = [1, 1]} : vector<2x128xf32> to vector<2x32xf32>
    %125 = arith.mulf %122, %85 : vector<2x32xf32>
    %126 = arith.mulf %121, %123 : vector<2x32xf32>
    %127 = arith.addf %125, %126 : vector<2x32xf32>
    %128 = math.tanh %127 : vector<2x32xf32>
    %129 = arith.mulf %124, %128 : vector<2x32xf32>
    %130 = tpu.concatenate %129, %109 in 1 : vector<2x32xf32>, vector<2x32xf32> -> vector<2x64xf32>
    %131 = arith.truncf %130 : vector<2x64xf32> to vector<2x64xbf16>
    %c0_43 = arith.constant 0 : index
    %c0_44 = arith.constant 0 : index
    %132 = vector.load %arg8[%c0_43, %c0_44] : memref<64x128xbf16, #tpu.memory_space<vmem>>, vector<64x128xbf16>
    %cst_45 = arith.constant dense<0.000000e+00> : vector<2x128xf32>
    %133 = tpu.matmul %131, %132, %cst_45 {dimension_numbers = #tpu.dot_dimension_numbers<[1], [0], [0], [1], [0, 0, 1, 1], [], []>} : vector<2x64xbf16>, vector<64x128xbf16>, vector<2x128xf32> -> vector<2x128xf32>
    %c0_46 = arith.constant 0 : index
    %c0_47 = arith.constant 0 : index
    %134 = vector.load %arg9[%c0_46, %c0_47] : memref<1x128xf32, #tpu.memory_space<vmem>>, vector<1x128xf32>
    %135 = vector.broadcast %134 : vector<1x128xf32> to vector<2x128xf32>
    %136 = arith.addf %133, %135 : vector<2x128xf32>
    %137 = arith.negf %136 : vector<2x128xf32>
    %138 = math.exp %137 : vector<2x128xf32>
    %cst_48 = arith.constant 1.000000e+00 : f32
    %139 = vector.broadcast %cst_48 : f32 to vector<2x128xf32>
    %140 = arith.addf %139, %138 : vector<2x128xf32>
    %141 = arith.divf %139, %140 : vector<2x128xf32>
    %142 = math.tanh %136 : vector<2x128xf32>
    %143 = vector.extract_strided_slice %141 {offsets = [0, 0], sizes = [2, 32], strides = [1, 1]} : vector<2x128xf32> to vector<2x32xf32>
    %144 = vector.extract_strided_slice %141 {offsets = [0, 32], sizes = [2, 32], strides = [1, 1]} : vector<2x128xf32> to vector<2x32xf32>
    %145 = vector.extract_strided_slice %142 {offsets = [0, 64], sizes = [2, 32], strides = [1, 1]} : vector<2x128xf32> to vector<2x32xf32>
    %146 = vector.extract_strided_slice %141 {offsets = [0, 96], sizes = [2, 32], strides = [1, 1]} : vector<2x128xf32> to vector<2x32xf32>
    %147 = arith.mulf %144, %107 : vector<2x32xf32>
    %148 = arith.mulf %143, %145 : vector<2x32xf32>
    %149 = arith.addf %147, %148 : vector<2x32xf32>
    %150 = math.tanh %149 : vector<2x32xf32>
    %151 = arith.mulf %146, %150 : vector<2x32xf32>
    %152 = vector.extract_strided_slice %21 {offsets = [6, 0], sizes = [2, 128], strides = [1, 1]} : vector<18x128xf32> to vector<2x128xf32>
    %153 = arith.truncf %129 : vector<2x32xf32> to vector<2x32xbf16>
    %c0_49 = arith.constant 0 : index
    %c0_50 = arith.constant 0 : index
    %154 = vector.load %arg6[%c0_49, %c0_50] : memref<32x128xbf16, #tpu.memory_space<vmem>>, vector<32x128xbf16>
    %cst_51 = arith.constant dense<0.000000e+00> : vector<2x128xf32>
    %155 = tpu.matmul %153, %154, %cst_51 {dimension_numbers = #tpu.dot_dimension_numbers<[1], [0], [0], [1], [0, 0, 1, 1], [], []>} : vector<2x32xbf16>, vector<32x128xbf16>, vector<2x128xf32> -> vector<2x128xf32>
    %156 = arith.addf %152, %155 : vector<2x128xf32>
    %157 = arith.negf %156 : vector<2x128xf32>
    %158 = math.exp %157 : vector<2x128xf32>
    %cst_52 = arith.constant 1.000000e+00 : f32
    %159 = vector.broadcast %cst_52 : f32 to vector<2x128xf32>
    %160 = arith.addf %159, %158 : vector<2x128xf32>
    %161 = arith.divf %159, %160 : vector<2x128xf32>
    %162 = math.tanh %156 : vector<2x128xf32>
    %163 = vector.extract_strided_slice %161 {offsets = [0, 0], sizes = [2, 32], strides = [1, 1]} : vector<2x128xf32> to vector<2x32xf32>
    %164 = vector.extract_strided_slice %161 {offsets = [0, 32], sizes = [2, 32], strides = [1, 1]} : vector<2x128xf32> to vector<2x32xf32>
    %165 = vector.extract_strided_slice %162 {offsets = [0, 64], sizes = [2, 32], strides = [1, 1]} : vector<2x128xf32> to vector<2x32xf32>
    %166 = vector.extract_strided_slice %161 {offsets = [0, 96], sizes = [2, 32], strides = [1, 1]} : vector<2x128xf32> to vector<2x32xf32>
    %167 = arith.mulf %164, %127 : vector<2x32xf32>
    %168 = arith.mulf %163, %165 : vector<2x32xf32>
    %169 = arith.addf %167, %168 : vector<2x32xf32>
    %170 = math.tanh %169 : vector<2x32xf32>
    %171 = arith.mulf %166, %170 : vector<2x32xf32>
    %172 = tpu.concatenate %171, %151 in 1 : vector<2x32xf32>, vector<2x32xf32> -> vector<2x64xf32>
    %173 = arith.truncf %172 : vector<2x64xf32> to vector<2x64xbf16>
    %c0_53 = arith.constant 0 : index
    %c0_54 = arith.constant 0 : index
    %174 = vector.load %arg8[%c0_53, %c0_54] : memref<64x128xbf16, #tpu.memory_space<vmem>>, vector<64x128xbf16>
    %cst_55 = arith.constant dense<0.000000e+00> : vector<2x128xf32>
    %175 = tpu.matmul %173, %174, %cst_55 {dimension_numbers = #tpu.dot_dimension_numbers<[1], [0], [0], [1], [0, 0, 1, 1], [], []>} : vector<2x64xbf16>, vector<64x128xbf16>, vector<2x128xf32> -> vector<2x128xf32>
    %c0_56 = arith.constant 0 : index
    %c0_57 = arith.constant 0 : index
    %176 = vector.load %arg9[%c0_56, %c0_57] : memref<1x128xf32, #tpu.memory_space<vmem>>, vector<1x128xf32>
    %177 = vector.broadcast %176 : vector<1x128xf32> to vector<2x128xf32>
    %178 = arith.addf %175, %177 : vector<2x128xf32>
    %179 = arith.negf %178 : vector<2x128xf32>
    %180 = math.exp %179 : vector<2x128xf32>
    %cst_58 = arith.constant 1.000000e+00 : f32
    %181 = vector.broadcast %cst_58 : f32 to vector<2x128xf32>
    %182 = arith.addf %181, %180 : vector<2x128xf32>
    %183 = arith.divf %181, %182 : vector<2x128xf32>
    %184 = math.tanh %178 : vector<2x128xf32>
    %185 = vector.extract_strided_slice %183 {offsets = [0, 0], sizes = [2, 32], strides = [1, 1]} : vector<2x128xf32> to vector<2x32xf32>
    %186 = vector.extract_strided_slice %183 {offsets = [0, 32], sizes = [2, 32], strides = [1, 1]} : vector<2x128xf32> to vector<2x32xf32>
    %187 = vector.extract_strided_slice %184 {offsets = [0, 64], sizes = [2, 32], strides = [1, 1]} : vector<2x128xf32> to vector<2x32xf32>
    %188 = vector.extract_strided_slice %183 {offsets = [0, 96], sizes = [2, 32], strides = [1, 1]} : vector<2x128xf32> to vector<2x32xf32>
    %189 = arith.mulf %186, %149 : vector<2x32xf32>
    %190 = arith.mulf %185, %187 : vector<2x32xf32>
    %191 = arith.addf %189, %190 : vector<2x32xf32>
    %192 = math.tanh %191 : vector<2x32xf32>
    %193 = arith.mulf %188, %192 : vector<2x32xf32>
    %194 = vector.extract_strided_slice %21 {offsets = [8, 0], sizes = [2, 128], strides = [1, 1]} : vector<18x128xf32> to vector<2x128xf32>
    %195 = arith.truncf %171 : vector<2x32xf32> to vector<2x32xbf16>
    %c0_59 = arith.constant 0 : index
    %c0_60 = arith.constant 0 : index
    %196 = vector.load %arg6[%c0_59, %c0_60] : memref<32x128xbf16, #tpu.memory_space<vmem>>, vector<32x128xbf16>
    %cst_61 = arith.constant dense<0.000000e+00> : vector<2x128xf32>
    %197 = tpu.matmul %195, %196, %cst_61 {dimension_numbers = #tpu.dot_dimension_numbers<[1], [0], [0], [1], [0, 0, 1, 1], [], []>} : vector<2x32xbf16>, vector<32x128xbf16>, vector<2x128xf32> -> vector<2x128xf32>
    %198 = arith.addf %194, %197 : vector<2x128xf32>
    %199 = arith.negf %198 : vector<2x128xf32>
    %200 = math.exp %199 : vector<2x128xf32>
    %cst_62 = arith.constant 1.000000e+00 : f32
    %201 = vector.broadcast %cst_62 : f32 to vector<2x128xf32>
    %202 = arith.addf %201, %200 : vector<2x128xf32>
    %203 = arith.divf %201, %202 : vector<2x128xf32>
    %204 = math.tanh %198 : vector<2x128xf32>
    %205 = vector.extract_strided_slice %203 {offsets = [0, 0], sizes = [2, 32], strides = [1, 1]} : vector<2x128xf32> to vector<2x32xf32>
    %206 = vector.extract_strided_slice %203 {offsets = [0, 32], sizes = [2, 32], strides = [1, 1]} : vector<2x128xf32> to vector<2x32xf32>
    %207 = vector.extract_strided_slice %204 {offsets = [0, 64], sizes = [2, 32], strides = [1, 1]} : vector<2x128xf32> to vector<2x32xf32>
    %208 = vector.extract_strided_slice %203 {offsets = [0, 96], sizes = [2, 32], strides = [1, 1]} : vector<2x128xf32> to vector<2x32xf32>
    %209 = arith.mulf %206, %169 : vector<2x32xf32>
    %210 = arith.mulf %205, %207 : vector<2x32xf32>
    %211 = arith.addf %209, %210 : vector<2x32xf32>
    %212 = math.tanh %211 : vector<2x32xf32>
    %213 = arith.mulf %208, %212 : vector<2x32xf32>
    %214 = tpu.concatenate %213, %193 in 1 : vector<2x32xf32>, vector<2x32xf32> -> vector<2x64xf32>
    %215 = arith.truncf %214 : vector<2x64xf32> to vector<2x64xbf16>
    %c0_63 = arith.constant 0 : index
    %c0_64 = arith.constant 0 : index
    %216 = vector.load %arg8[%c0_63, %c0_64] : memref<64x128xbf16, #tpu.memory_space<vmem>>, vector<64x128xbf16>
    %cst_65 = arith.constant dense<0.000000e+00> : vector<2x128xf32>
    %217 = tpu.matmul %215, %216, %cst_65 {dimension_numbers = #tpu.dot_dimension_numbers<[1], [0], [0], [1], [0, 0, 1, 1], [], []>} : vector<2x64xbf16>, vector<64x128xbf16>, vector<2x128xf32> -> vector<2x128xf32>
    %c0_66 = arith.constant 0 : index
    %c0_67 = arith.constant 0 : index
    %218 = vector.load %arg9[%c0_66, %c0_67] : memref<1x128xf32, #tpu.memory_space<vmem>>, vector<1x128xf32>
    %219 = vector.broadcast %218 : vector<1x128xf32> to vector<2x128xf32>
    %220 = arith.addf %217, %219 : vector<2x128xf32>
    %221 = arith.negf %220 : vector<2x128xf32>
    %222 = math.exp %221 : vector<2x128xf32>
    %cst_68 = arith.constant 1.000000e+00 : f32
    %223 = vector.broadcast %cst_68 : f32 to vector<2x128xf32>
    %224 = arith.addf %223, %222 : vector<2x128xf32>
    %225 = arith.divf %223, %224 : vector<2x128xf32>
    %226 = math.tanh %220 : vector<2x128xf32>
    %227 = vector.extract_strided_slice %225 {offsets = [0, 0], sizes = [2, 32], strides = [1, 1]} : vector<2x128xf32> to vector<2x32xf32>
    %228 = vector.extract_strided_slice %225 {offsets = [0, 32], sizes = [2, 32], strides = [1, 1]} : vector<2x128xf32> to vector<2x32xf32>
    %229 = vector.extract_strided_slice %226 {offsets = [0, 64], sizes = [2, 32], strides = [1, 1]} : vector<2x128xf32> to vector<2x32xf32>
    %230 = vector.extract_strided_slice %225 {offsets = [0, 96], sizes = [2, 32], strides = [1, 1]} : vector<2x128xf32> to vector<2x32xf32>
    %231 = arith.mulf %228, %191 : vector<2x32xf32>
    %232 = arith.mulf %227, %229 : vector<2x32xf32>
    %233 = arith.addf %231, %232 : vector<2x32xf32>
    %234 = math.tanh %233 : vector<2x32xf32>
    %235 = arith.mulf %230, %234 : vector<2x32xf32>
    %236 = vector.extract_strided_slice %21 {offsets = [10, 0], sizes = [2, 128], strides = [1, 1]} : vector<18x128xf32> to vector<2x128xf32>
    %237 = arith.truncf %213 : vector<2x32xf32> to vector<2x32xbf16>
    %c0_69 = arith.constant 0 : index
    %c0_70 = arith.constant 0 : index
    %238 = vector.load %arg6[%c0_69, %c0_70] : memref<32x128xbf16, #tpu.memory_space<vmem>>, vector<32x128xbf16>
    %cst_71 = arith.constant dense<0.000000e+00> : vector<2x128xf32>
    %239 = tpu.matmul %237, %238, %cst_71 {dimension_numbers = #tpu.dot_dimension_numbers<[1], [0], [0], [1], [0, 0, 1, 1], [], []>} : vector<2x32xbf16>, vector<32x128xbf16>, vector<2x128xf32> -> vector<2x128xf32>
    %240 = arith.addf %236, %239 : vector<2x128xf32>
    %241 = arith.negf %240 : vector<2x128xf32>
    %242 = math.exp %241 : vector<2x128xf32>
    %cst_72 = arith.constant 1.000000e+00 : f32
    %243 = vector.broadcast %cst_72 : f32 to vector<2x128xf32>
    %244 = arith.addf %243, %242 : vector<2x128xf32>
    %245 = arith.divf %243, %244 : vector<2x128xf32>
    %246 = math.tanh %240 : vector<2x128xf32>
    %247 = vector.extract_strided_slice %245 {offsets = [0, 0], sizes = [2, 32], strides = [1, 1]} : vector<2x128xf32> to vector<2x32xf32>
    %248 = vector.extract_strided_slice %245 {offsets = [0, 32], sizes = [2, 32], strides = [1, 1]} : vector<2x128xf32> to vector<2x32xf32>
    %249 = vector.extract_strided_slice %246 {offsets = [0, 64], sizes = [2, 32], strides = [1, 1]} : vector<2x128xf32> to vector<2x32xf32>
    %250 = vector.extract_strided_slice %245 {offsets = [0, 96], sizes = [2, 32], strides = [1, 1]} : vector<2x128xf32> to vector<2x32xf32>
    %251 = arith.mulf %248, %211 : vector<2x32xf32>
    %252 = arith.mulf %247, %249 : vector<2x32xf32>
    %253 = arith.addf %251, %252 : vector<2x32xf32>
    %254 = math.tanh %253 : vector<2x32xf32>
    %255 = arith.mulf %250, %254 : vector<2x32xf32>
    %256 = tpu.concatenate %255, %235 in 1 : vector<2x32xf32>, vector<2x32xf32> -> vector<2x64xf32>
    %257 = arith.truncf %256 : vector<2x64xf32> to vector<2x64xbf16>
    %c0_73 = arith.constant 0 : index
    %c0_74 = arith.constant 0 : index
    %258 = vector.load %arg8[%c0_73, %c0_74] : memref<64x128xbf16, #tpu.memory_space<vmem>>, vector<64x128xbf16>
    %cst_75 = arith.constant dense<0.000000e+00> : vector<2x128xf32>
    %259 = tpu.matmul %257, %258, %cst_75 {dimension_numbers = #tpu.dot_dimension_numbers<[1], [0], [0], [1], [0, 0, 1, 1], [], []>} : vector<2x64xbf16>, vector<64x128xbf16>, vector<2x128xf32> -> vector<2x128xf32>
    %c0_76 = arith.constant 0 : index
    %c0_77 = arith.constant 0 : index
    %260 = vector.load %arg9[%c0_76, %c0_77] : memref<1x128xf32, #tpu.memory_space<vmem>>, vector<1x128xf32>
    %261 = vector.broadcast %260 : vector<1x128xf32> to vector<2x128xf32>
    %262 = arith.addf %259, %261 : vector<2x128xf32>
    %263 = arith.negf %262 : vector<2x128xf32>
    %264 = math.exp %263 : vector<2x128xf32>
    %cst_78 = arith.constant 1.000000e+00 : f32
    %265 = vector.broadcast %cst_78 : f32 to vector<2x128xf32>
    %266 = arith.addf %265, %264 : vector<2x128xf32>
    %267 = arith.divf %265, %266 : vector<2x128xf32>
    %268 = math.tanh %262 : vector<2x128xf32>
    %269 = vector.extract_strided_slice %267 {offsets = [0, 0], sizes = [2, 32], strides = [1, 1]} : vector<2x128xf32> to vector<2x32xf32>
    %270 = vector.extract_strided_slice %267 {offsets = [0, 32], sizes = [2, 32], strides = [1, 1]} : vector<2x128xf32> to vector<2x32xf32>
    %271 = vector.extract_strided_slice %268 {offsets = [0, 64], sizes = [2, 32], strides = [1, 1]} : vector<2x128xf32> to vector<2x32xf32>
    %272 = vector.extract_strided_slice %267 {offsets = [0, 96], sizes = [2, 32], strides = [1, 1]} : vector<2x128xf32> to vector<2x32xf32>
    %273 = arith.mulf %270, %233 : vector<2x32xf32>
    %274 = arith.mulf %269, %271 : vector<2x32xf32>
    %275 = arith.addf %273, %274 : vector<2x32xf32>
    %276 = math.tanh %275 : vector<2x32xf32>
    %277 = arith.mulf %272, %276 : vector<2x32xf32>
    %278 = vector.extract_strided_slice %21 {offsets = [12, 0], sizes = [2, 128], strides = [1, 1]} : vector<18x128xf32> to vector<2x128xf32>
    %279 = arith.truncf %255 : vector<2x32xf32> to vector<2x32xbf16>
    %c0_79 = arith.constant 0 : index
    %c0_80 = arith.constant 0 : index
    %280 = vector.load %arg6[%c0_79, %c0_80] : memref<32x128xbf16, #tpu.memory_space<vmem>>, vector<32x128xbf16>
    %cst_81 = arith.constant dense<0.000000e+00> : vector<2x128xf32>
    %281 = tpu.matmul %279, %280, %cst_81 {dimension_numbers = #tpu.dot_dimension_numbers<[1], [0], [0], [1], [0, 0, 1, 1], [], []>} : vector<2x32xbf16>, vector<32x128xbf16>, vector<2x128xf32> -> vector<2x128xf32>
    %282 = arith.addf %278, %281 : vector<2x128xf32>
    %283 = arith.negf %282 : vector<2x128xf32>
    %284 = math.exp %283 : vector<2x128xf32>
    %cst_82 = arith.constant 1.000000e+00 : f32
    %285 = vector.broadcast %cst_82 : f32 to vector<2x128xf32>
    %286 = arith.addf %285, %284 : vector<2x128xf32>
    %287 = arith.divf %285, %286 : vector<2x128xf32>
    %288 = math.tanh %282 : vector<2x128xf32>
    %289 = vector.extract_strided_slice %287 {offsets = [0, 0], sizes = [2, 32], strides = [1, 1]} : vector<2x128xf32> to vector<2x32xf32>
    %290 = vector.extract_strided_slice %287 {offsets = [0, 32], sizes = [2, 32], strides = [1, 1]} : vector<2x128xf32> to vector<2x32xf32>
    %291 = vector.extract_strided_slice %288 {offsets = [0, 64], sizes = [2, 32], strides = [1, 1]} : vector<2x128xf32> to vector<2x32xf32>
    %292 = vector.extract_strided_slice %287 {offsets = [0, 96], sizes = [2, 32], strides = [1, 1]} : vector<2x128xf32> to vector<2x32xf32>
    %293 = arith.mulf %290, %253 : vector<2x32xf32>
    %294 = arith.mulf %289, %291 : vector<2x32xf32>
    %295 = arith.addf %293, %294 : vector<2x32xf32>
    %296 = math.tanh %295 : vector<2x32xf32>
    %297 = arith.mulf %292, %296 : vector<2x32xf32>
    %298 = tpu.concatenate %297, %277 in 1 : vector<2x32xf32>, vector<2x32xf32> -> vector<2x64xf32>
    %299 = arith.truncf %298 : vector<2x64xf32> to vector<2x64xbf16>
    %c0_83 = arith.constant 0 : index
    %c0_84 = arith.constant 0 : index
    %300 = vector.load %arg8[%c0_83, %c0_84] : memref<64x128xbf16, #tpu.memory_space<vmem>>, vector<64x128xbf16>
    %cst_85 = arith.constant dense<0.000000e+00> : vector<2x128xf32>
    %301 = tpu.matmul %299, %300, %cst_85 {dimension_numbers = #tpu.dot_dimension_numbers<[1], [0], [0], [1], [0, 0, 1, 1], [], []>} : vector<2x64xbf16>, vector<64x128xbf16>, vector<2x128xf32> -> vector<2x128xf32>
    %c0_86 = arith.constant 0 : index
    %c0_87 = arith.constant 0 : index
    %302 = vector.load %arg9[%c0_86, %c0_87] : memref<1x128xf32, #tpu.memory_space<vmem>>, vector<1x128xf32>
    %303 = vector.broadcast %302 : vector<1x128xf32> to vector<2x128xf32>
    %304 = arith.addf %301, %303 : vector<2x128xf32>
    %305 = arith.negf %304 : vector<2x128xf32>
    %306 = math.exp %305 : vector<2x128xf32>
    %cst_88 = arith.constant 1.000000e+00 : f32
    %307 = vector.broadcast %cst_88 : f32 to vector<2x128xf32>
    %308 = arith.addf %307, %306 : vector<2x128xf32>
    %309 = arith.divf %307, %308 : vector<2x128xf32>
    %310 = math.tanh %304 : vector<2x128xf32>
    %311 = vector.extract_strided_slice %309 {offsets = [0, 0], sizes = [2, 32], strides = [1, 1]} : vector<2x128xf32> to vector<2x32xf32>
    %312 = vector.extract_strided_slice %309 {offsets = [0, 32], sizes = [2, 32], strides = [1, 1]} : vector<2x128xf32> to vector<2x32xf32>
    %313 = vector.extract_strided_slice %310 {offsets = [0, 64], sizes = [2, 32], strides = [1, 1]} : vector<2x128xf32> to vector<2x32xf32>
    %314 = vector.extract_strided_slice %309 {offsets = [0, 96], sizes = [2, 32], strides = [1, 1]} : vector<2x128xf32> to vector<2x32xf32>
    %315 = arith.mulf %312, %275 : vector<2x32xf32>
    %316 = arith.mulf %311, %313 : vector<2x32xf32>
    %317 = arith.addf %315, %316 : vector<2x32xf32>
    %318 = math.tanh %317 : vector<2x32xf32>
    %319 = arith.mulf %314, %318 : vector<2x32xf32>
    %320 = vector.extract_strided_slice %21 {offsets = [14, 0], sizes = [2, 128], strides = [1, 1]} : vector<18x128xf32> to vector<2x128xf32>
    %321 = arith.truncf %297 : vector<2x32xf32> to vector<2x32xbf16>
    %c0_89 = arith.constant 0 : index
    %c0_90 = arith.constant 0 : index
    %322 = vector.load %arg6[%c0_89, %c0_90] : memref<32x128xbf16, #tpu.memory_space<vmem>>, vector<32x128xbf16>
    %cst_91 = arith.constant dense<0.000000e+00> : vector<2x128xf32>
    %323 = tpu.matmul %321, %322, %cst_91 {dimension_numbers = #tpu.dot_dimension_numbers<[1], [0], [0], [1], [0, 0, 1, 1], [], []>} : vector<2x32xbf16>, vector<32x128xbf16>, vector<2x128xf32> -> vector<2x128xf32>
    %324 = arith.addf %320, %323 : vector<2x128xf32>
    %325 = arith.negf %324 : vector<2x128xf32>
    %326 = math.exp %325 : vector<2x128xf32>
    %cst_92 = arith.constant 1.000000e+00 : f32
    %327 = vector.broadcast %cst_92 : f32 to vector<2x128xf32>
    %328 = arith.addf %327, %326 : vector<2x128xf32>
    %329 = arith.divf %327, %328 : vector<2x128xf32>
    %330 = math.tanh %324 : vector<2x128xf32>
    %331 = vector.extract_strided_slice %329 {offsets = [0, 0], sizes = [2, 32], strides = [1, 1]} : vector<2x128xf32> to vector<2x32xf32>
    %332 = vector.extract_strided_slice %329 {offsets = [0, 32], sizes = [2, 32], strides = [1, 1]} : vector<2x128xf32> to vector<2x32xf32>
    %333 = vector.extract_strided_slice %330 {offsets = [0, 64], sizes = [2, 32], strides = [1, 1]} : vector<2x128xf32> to vector<2x32xf32>
    %334 = vector.extract_strided_slice %329 {offsets = [0, 96], sizes = [2, 32], strides = [1, 1]} : vector<2x128xf32> to vector<2x32xf32>
    %335 = arith.mulf %332, %295 : vector<2x32xf32>
    %336 = arith.mulf %331, %333 : vector<2x32xf32>
    %337 = arith.addf %335, %336 : vector<2x32xf32>
    %338 = math.tanh %337 : vector<2x32xf32>
    %339 = arith.mulf %334, %338 : vector<2x32xf32>
    %340 = tpu.concatenate %339, %319 in 1 : vector<2x32xf32>, vector<2x32xf32> -> vector<2x64xf32>
    %341 = arith.truncf %340 : vector<2x64xf32> to vector<2x64xbf16>
    %c0_93 = arith.constant 0 : index
    %c0_94 = arith.constant 0 : index
    %342 = vector.load %arg8[%c0_93, %c0_94] : memref<64x128xbf16, #tpu.memory_space<vmem>>, vector<64x128xbf16>
    %cst_95 = arith.constant dense<0.000000e+00> : vector<2x128xf32>
    %343 = tpu.matmul %341, %342, %cst_95 {dimension_numbers = #tpu.dot_dimension_numbers<[1], [0], [0], [1], [0, 0, 1, 1], [], []>} : vector<2x64xbf16>, vector<64x128xbf16>, vector<2x128xf32> -> vector<2x128xf32>
    %c0_96 = arith.constant 0 : index
    %c0_97 = arith.constant 0 : index
    %344 = vector.load %arg9[%c0_96, %c0_97] : memref<1x128xf32, #tpu.memory_space<vmem>>, vector<1x128xf32>
    %345 = vector.broadcast %344 : vector<1x128xf32> to vector<2x128xf32>
    %346 = arith.addf %343, %345 : vector<2x128xf32>
    %347 = arith.negf %346 : vector<2x128xf32>
    %348 = math.exp %347 : vector<2x128xf32>
    %cst_98 = arith.constant 1.000000e+00 : f32
    %349 = vector.broadcast %cst_98 : f32 to vector<2x128xf32>
    %350 = arith.addf %349, %348 : vector<2x128xf32>
    %351 = arith.divf %349, %350 : vector<2x128xf32>
    %352 = math.tanh %346 : vector<2x128xf32>
    %353 = vector.extract_strided_slice %351 {offsets = [0, 0], sizes = [2, 32], strides = [1, 1]} : vector<2x128xf32> to vector<2x32xf32>
    %354 = vector.extract_strided_slice %351 {offsets = [0, 32], sizes = [2, 32], strides = [1, 1]} : vector<2x128xf32> to vector<2x32xf32>
    %355 = vector.extract_strided_slice %352 {offsets = [0, 64], sizes = [2, 32], strides = [1, 1]} : vector<2x128xf32> to vector<2x32xf32>
    %356 = vector.extract_strided_slice %351 {offsets = [0, 96], sizes = [2, 32], strides = [1, 1]} : vector<2x128xf32> to vector<2x32xf32>
    %357 = arith.mulf %354, %317 : vector<2x32xf32>
    %358 = arith.mulf %353, %355 : vector<2x32xf32>
    %359 = arith.addf %357, %358 : vector<2x32xf32>
    %360 = math.tanh %359 : vector<2x32xf32>
    %361 = arith.mulf %356, %360 : vector<2x32xf32>
    %362 = vector.extract_strided_slice %21 {offsets = [16, 0], sizes = [2, 128], strides = [1, 1]} : vector<18x128xf32> to vector<2x128xf32>
    %363 = arith.truncf %339 : vector<2x32xf32> to vector<2x32xbf16>
    %c0_99 = arith.constant 0 : index
    %c0_100 = arith.constant 0 : index
    %364 = vector.load %arg6[%c0_99, %c0_100] : memref<32x128xbf16, #tpu.memory_space<vmem>>, vector<32x128xbf16>
    %cst_101 = arith.constant dense<0.000000e+00> : vector<2x128xf32>
    %365 = tpu.matmul %363, %364, %cst_101 {dimension_numbers = #tpu.dot_dimension_numbers<[1], [0], [0], [1], [0, 0, 1, 1], [], []>} : vector<2x32xbf16>, vector<32x128xbf16>, vector<2x128xf32> -> vector<2x128xf32>
    %366 = arith.addf %362, %365 : vector<2x128xf32>
    %367 = arith.negf %366 : vector<2x128xf32>
    %368 = math.exp %367 : vector<2x128xf32>
    %cst_102 = arith.constant 1.000000e+00 : f32
    %369 = vector.broadcast %cst_102 : f32 to vector<2x128xf32>
    %370 = arith.addf %369, %368 : vector<2x128xf32>
    %371 = arith.divf %369, %370 : vector<2x128xf32>
    %372 = math.tanh %366 : vector<2x128xf32>
    %373 = vector.extract_strided_slice %371 {offsets = [0, 0], sizes = [2, 32], strides = [1, 1]} : vector<2x128xf32> to vector<2x32xf32>
    %374 = vector.extract_strided_slice %371 {offsets = [0, 32], sizes = [2, 32], strides = [1, 1]} : vector<2x128xf32> to vector<2x32xf32>
    %375 = vector.extract_strided_slice %372 {offsets = [0, 64], sizes = [2, 32], strides = [1, 1]} : vector<2x128xf32> to vector<2x32xf32>
    %376 = vector.extract_strided_slice %371 {offsets = [0, 96], sizes = [2, 32], strides = [1, 1]} : vector<2x128xf32> to vector<2x32xf32>
    %377 = arith.mulf %374, %337 : vector<2x32xf32>
    %378 = arith.mulf %373, %375 : vector<2x32xf32>
    %379 = arith.addf %377, %378 : vector<2x32xf32>
    %380 = math.tanh %379 : vector<2x32xf32>
    %381 = arith.mulf %376, %380 : vector<2x32xf32>
    %382 = tpu.concatenate %381, %361 in 1 : vector<2x32xf32>, vector<2x32xf32> -> vector<2x64xf32>
    %383 = arith.truncf %382 : vector<2x64xf32> to vector<2x64xbf16>
    %c0_103 = arith.constant 0 : index
    %c0_104 = arith.constant 0 : index
    %384 = vector.load %arg8[%c0_103, %c0_104] : memref<64x128xbf16, #tpu.memory_space<vmem>>, vector<64x128xbf16>
    %cst_105 = arith.constant dense<0.000000e+00> : vector<2x128xf32>
    %385 = tpu.matmul %383, %384, %cst_105 {dimension_numbers = #tpu.dot_dimension_numbers<[1], [0], [0], [1], [0, 0, 1, 1], [], []>} : vector<2x64xbf16>, vector<64x128xbf16>, vector<2x128xf32> -> vector<2x128xf32>
    %c0_106 = arith.constant 0 : index
    %c0_107 = arith.constant 0 : index
    %386 = vector.load %arg9[%c0_106, %c0_107] : memref<1x128xf32, #tpu.memory_space<vmem>>, vector<1x128xf32>
    %387 = vector.broadcast %386 : vector<1x128xf32> to vector<2x128xf32>
    %388 = arith.addf %385, %387 : vector<2x128xf32>
    %389 = arith.negf %388 : vector<2x128xf32>
    %390 = math.exp %389 : vector<2x128xf32>
    %cst_108 = arith.constant 1.000000e+00 : f32
    %391 = vector.broadcast %cst_108 : f32 to vector<2x128xf32>
    %392 = arith.addf %391, %390 : vector<2x128xf32>
    %393 = arith.divf %391, %392 : vector<2x128xf32>
    %394 = math.tanh %388 : vector<2x128xf32>
    %395 = vector.extract_strided_slice %393 {offsets = [0, 0], sizes = [2, 32], strides = [1, 1]} : vector<2x128xf32> to vector<2x32xf32>
    %396 = vector.extract_strided_slice %393 {offsets = [0, 32], sizes = [2, 32], strides = [1, 1]} : vector<2x128xf32> to vector<2x32xf32>
    %397 = vector.extract_strided_slice %394 {offsets = [0, 64], sizes = [2, 32], strides = [1, 1]} : vector<2x128xf32> to vector<2x32xf32>
    %398 = vector.extract_strided_slice %393 {offsets = [0, 96], sizes = [2, 32], strides = [1, 1]} : vector<2x128xf32> to vector<2x32xf32>
    %399 = arith.mulf %396, %359 : vector<2x32xf32>
    %400 = arith.mulf %395, %397 : vector<2x32xf32>
    %401 = arith.addf %399, %400 : vector<2x32xf32>
    %402 = math.tanh %401 : vector<2x32xf32>
    %403 = arith.mulf %398, %402 : vector<2x32xf32>
    %404 = tpu.concatenate %67, %109, %151, %193, %235, %277, %319, %361, %403 in 0 : vector<2x32xf32>, vector<2x32xf32>, vector<2x32xf32>, vector<2x32xf32>, vector<2x32xf32>, vector<2x32xf32>, vector<2x32xf32>, vector<2x32xf32>, vector<2x32xf32> -> vector<18x32xf32>
    %405 = arith.truncf %404 : vector<18x32xf32> to vector<18x32xbf16>
    %c0_109 = arith.constant 0 : index
    %c0_110 = arith.constant 0 : index
    %406 = vector.load %arg10[%c0_109, %c0_110] : memref<32x64xbf16, #tpu.memory_space<vmem>>, vector<32x64xbf16>
    %cst_111 = arith.constant dense<0.000000e+00> : vector<18x64xf32>
    %407 = tpu.matmul %405, %406, %cst_111 {dimension_numbers = #tpu.dot_dimension_numbers<[1], [0], [0], [1], [0, 0, 1, 1], [], []>} : vector<18x32xbf16>, vector<32x64xbf16>, vector<18x64xf32> -> vector<18x64xf32>
    %c0_112 = arith.constant 0 : index
    %c0_113 = arith.constant 0 : index
    %408 = vector.load %arg11[%c0_112, %c0_113] : memref<1x64xf32, #tpu.memory_space<vmem>>, vector<1x64xf32>
    %409 = vector.broadcast %408 : vector<1x64xf32> to vector<18x64xf32>
    %410 = arith.addf %407, %409 : vector<18x64xf32>
    %411 = arith.truncf %410 : vector<18x64xf32> to vector<18x64xbf16>
    %c0_114 = arith.constant 0 : index
    %c0_115 = arith.constant 0 : index
    %412 = vector.load %arg12[%c0_114, %c0_115] : memref<64x128xbf16, #tpu.memory_space<vmem>>, vector<64x128xbf16>
    %cst_116 = arith.constant dense<0.000000e+00> : vector<18x128xf32>
    %413 = tpu.matmul %411, %412, %cst_116 {dimension_numbers = #tpu.dot_dimension_numbers<[1], [0], [0], [1], [0, 0, 1, 1], [], []>} : vector<18x64xbf16>, vector<64x128xbf16>, vector<18x128xf32> -> vector<18x128xf32>
    %c0_117 = arith.constant 0 : index
    %c0_118 = arith.constant 0 : index
    %414 = vector.load %arg13[%c0_117, %c0_118] : memref<1x128xf32, #tpu.memory_space<vmem>>, vector<1x128xf32>
    %415 = vector.broadcast %414 : vector<1x128xf32> to vector<18x128xf32>
    %416 = arith.addf %413, %415 : vector<18x128xf32>
    %c0_119 = arith.constant 0 : index
    %c0_120 = arith.constant 0 : index
    %417 = vector.load %arg14[%c0_119, %c0_120] : memref<18x128xf32, #tpu.memory_space<vmem>>, vector<18x128xf32>
    tpu.vector_store %arg14[%c0_119, %c0_120], %416 {strides = array<i32>} : memref<18x128xf32, #tpu.memory_space<vmem>>, vector<18x128xf32>,
    return
  }
}

</mosaic_0001>

<bundles_post_ra>
// kernel: decoder_forward.1
= control target key start
LH: loop header
LB: loop body
LE: loop exit
PB: predicated region body
PF: predicated region fallthrough
CT: control target
= control target key end

     0   :  { %v3402_v0 = vmov 0   ;;  %v3403_v24 = vmov 1966171168   ;;  %v189_v26 = vlaneseq  ;;  %vm3405_vm0 = vmmov 0   ;;  %s3406_s22 = smov 64   ;;  %s4198_s0 = inlined_call_operand.vmem [shape: s32[16,1], index: 0, kind: input, shape index: {}]   ;;  %s4199_s2 = inlined_call_operand.vmem [shape: bf16[1024,32], index: 2, kind: input, shape index: {}]   ;;  %s4200_s1 = inlined_call_operand.vmem [shape: bf16[2,1024], index: 1, kind: input, shape index: {}]   ;;  %s4201_s4 = inlined_call_operand.vmem [shape: bf16[64,32], index: 4, kind: input, shape index: {}]   ;;  %s4202_s5 = inlined_call_operand.vmem [shape: bf16[32,128], index: 5, kind: input, shape index: {}]   ;;  %s4203_s6 = inlined_call_operand.vmem [shape: bf16[32,128], index: 6, kind: input, shape index: {}]   ;;  %s4204_s3 = inlined_call_operand.vmem [shape: f32[1,32], index: 3, kind: input, shape index: {}]   ;;  %s4205_s7 = inlined_call_operand.vmem [shape: f32[1,128], index: 7, kind: input, shape index: {}]   ;;  %s4206_s8 = inlined_call_operand.vmem [shape: bf16[64,128], index: 8, kind: input, shape index: {}]   ;;  %s4207_s9 = inlined_call_operand.vmem [shape: f32[1,128], index: 9, kind: input, shape index: {}]   ;;  %s4208_s10 = inlined_call_operand.vmem [shape: bf16[32,64], index: 10, kind: input, shape index: {}]   ;;  %s4209_s12 = inlined_call_operand.vmem [shape: bf16[64,128], index: 12, kind: input, shape index: {}]   ;;  %s4210_s11 = inlined_call_operand.vmem [shape: f32[1,64], index: 11, kind: input, shape index: {}]   ;;  %s4211_s13 = inlined_call_operand.vmem [shape: f32[1,128], index: 13, kind: input, shape index: {}]   ;;  %s4212_s14 = inlined_call_operand.vmem [shape: f32[18,128], index: 14, kind: output, shape index: {}]  }
   0x1   :  { %3167 = vset.pattern.permute.xlu0 %v3402_v0  ;;  %v786_v1 = vld [vmem:[%s4198_s0] sm:$0xff]  ;;  %v787_v2 = vld [vmem:[%s4198_s0 + $0x8] sm:$0xff]  ;;  %v3176_v11 = vld [vmem:[%s4199_s2 + $0x50] sm:$0xff]   ;;  %v187_v25 = vunpack.c.l.s4 %v3403_v24  ;;  %vm835_vm3 = vcmask 523264   ;;  %vm882_vm4 = vcmask 1041408   ;;  %vm915_vm5 = vcmask 261120  }
   0x2   :  { %791 = vperm.xlu0 %3167, %v786_v1   ;;  %v3168_v3 = vld [vmem:[%s4199_s2 + $0x40] sm:$0xff]   ;;  %v3172_v7 = vld [vmem:[%s4199_s2 + $0x48] sm:$0xff]   ;;  %v3177_v12 = vld [vmem:[%s4199_s2 + $0x10] sm:$0xff]   ;;  %v190_v32 = vshrl.u32 %v189_v26, 7  ;;  %vm2437_vm6 = vcmask 1043456   ;;  %vm2439_vm7 = vcmask 1045504  }
   0x3   :  { %v3169_v4 = vld [vmem:[%s4199_s2] sm:$0xff]   ;;  %2762 = vmatprep.subr.bf16.mxu0 %v3168_v3  ;;  %v3173_v8 = vld [vmem:[%s4199_s2 + $0x8] sm:$0xff]   ;;  %v3178_v13 = vld [vmem:[%s4199_s2 + $0xd0] sm:$0xff]   ;;  %v188_v31 = vunpack.c.0.s8 %v187_v25  ;;  %v3404_v25 = vmov 0.0  }
   0x4   :  { %v3170_v5 = vld [vmem:[%s4199_s2 + $0xc0] sm:$0xff]   ;;  %2763 = vmatpush3.bf16.msra.mxu0 %v3169_v4  ;;  %v3174_v9 = vld [vmem:[%s4199_s2 + $0xc8] sm:$0xff]   ;;  %v3179_v14 = vld [vmem:[%s4199_s2 + $0x90] sm:$0xff]  }
   0x5   :  { %v3171_v6 = vld [vmem:[%s4199_s2 + $0x80] sm:$0xff]   ;;  %2784 = vmatprep.subr.bf16.mxu1 %v3170_v5  ;;  %2764 = vmatprep.subr.bf16.mxu0 %v3172_v7  ;;  %v3175_v10 = vld [vmem:[%s4199_s2 + $0x88] sm:$0xff]   ;;  %v3180_v15 = vld [vmem:[%s4199_s2 + $0x58] sm:$0xff]   ;;  %v3578_v37 = vsub.s32 %v188_v31, %v190_v32 }
   0x6   :  { %794 = vperm.xlu0 %3167, %v787_v2   ;;  %2785 = vmatpush3.bf16.msra.mxu1 %v3171_v6  ;;  %v3181_v16 = vld [vmem:[%s4199_s2 + $0x18] sm:$0xff]   ;;  %v3184_v19 = vld [vmem:[%s4199_s2 + $0x60] sm:$0xff]   ;;  %v3188_v23 = vld [vmem:[%s4199_s2 + $0x68] sm:$0xff]  }
   0x7   :  { %2786 = vmatprep.subr.bf16.mxu1 %v3174_v9  ;;  %v3182_v17 = vld [vmem:[%s4199_s2 + $0xd8] sm:$0xff]   ;;  %v3185_v20 = vld [vmem:[%s4199_s2 + $0x20] sm:$0xff]   ;;  %v3189_v27 = vld [vmem:[%s4199_s2 + $0x28] sm:$0xff]  }
   0x8   :  { %2765 = vmatpush3.bf16.msra.mxu0 %v3173_v8  ;;  %v3183_v18 = vld [vmem:[%s4199_s2 + $0x98] sm:$0xff]   ;;  %v3186_v21 = vld [vmem:[%s4199_s2 + $0xe0] sm:$0xff]   ;;  %v3190_v28 = vld [vmem:[%s4199_s2 + $0xe8] sm:$0xff]  }
   0x9   :  { %2766 = vmatprep.subr.bf16.mxu0 %v3176_v11  ;;  %v3187_v22 = vld [vmem:[%s4199_s2 + $0xa0] sm:$0xff]   ;;  %v3191_v29 = vld [vmem:[%s4199_s2 + $0xa8] sm:$0xff]   ;;  %v3192_v30 = vld [vmem:[%s4199_s2 + $0x70] sm:$0xff]  }
   0xa   :  { %2787 = vmatpush3.bf16.msra.mxu1 %v3175_v10  ;;  %v3193_v33 = vld [vmem:[%s4199_s2 + $0x30] sm:$0xff]   ;;  %v3196_v36 = vld [vmem:[%s4199_s2 + $0x78] sm:$0xff]   ;;  %v48_v41 = vld [vmem:[%s4200_s1] sm:$0xff] }
   0xb   :  { %2788 = vmatprep.subr.bf16.mxu1 %v3178_v13  ;;  %v3194_v34 = vld [vmem:[%s4199_s2 + $0xf0] sm:$0xff]   ;;  %v3197_v38 = vld [vmem:[%s4199_s2 + $0x38] sm:$0xff]   ;;  %v185_v42 = vcombine.high %v48_v41, %v48_v41  ;;  %v192_v43 = vrot.slane %v48_v41, %v3578_v37  ;;  %v3201_v44 = vld [vmem:[%s4199_s2 + $0x140] sm:$0xff]  }
   0xc   :  { %2767 = vmatpush3.bf16.msra.mxu0 %v3177_v12  ;;  %v3195_v35 = vld [vmem:[%s4199_s2 + $0xb0] sm:$0xff]   ;;  %v3198_v39 = vld [vmem:[%s4199_s2 + $0xf8] sm:$0xff]   ;;  %v3203_v47 = vld [vmem:[%s4199_s2 + $0x1c0] sm:$0xff]  }
   0xd   :  { %2768 = vmatprep.subr.bf16.mxu0 %v3180_v15  ;;  %v3199_v40 = vld [vmem:[%s4199_s2 + $0xb8] sm:$0xff]   ;;  %v200_v45 = vcombine.high %v192_v43, %v192_v43  ;;  %v208_v46 = vrot.slane %v192_v43, %v3578_v37  ;;  %v3601_v48 = vrot.slane %v185_v42, %v3578_v37  ;;  %v3202_v50 = vld [vmem:[%s4199_s2 + $0x100] sm:$0xff]   ;;  %v3205_v53 = vld [vmem:[%s4199_s2 + $0x148] sm:$0xff]  }
   0xe   :  { %2789 = vmatpush3.bf16.msra.mxu1 %v3179_v14  ;;  %v3204_v55 = vld [vmem:[%s4199_s2 + $0x180] sm:$0xff]   ;;  %v3207_v57 = vld [vmem:[%s4199_s2 + $0x1c8] sm:$0xff]   ;;  %v3209_v60 = vld [vmem:[%s4199_s2 + $0x150] sm:$0xff]  }
   0xf   :  { %2790 = vmatprep.subr.bf16.mxu1 %v3182_v17  ;;  %v222_v49 = vrot.slane %v200_v45, %v3578_v37  ;;  %v201_v51 = vcombine.high %v3601_v48, %v3601_v48  ;;  %v230_v52 = vcombine.high %v208_v46, %v208_v46  ;;  %v3206_v58 = vld [vmem:[%s4199_s2 + $0x108] sm:$0xff]   ;;  %v3211_v62 = vld [vmem:[%s4199_s2 + $0x1d0] sm:$0xff]   ;;  %v3213_v1 = vld [vmem:[%s4199_s2 + $0x158] sm:$0xff]  }
  0x10   :  { %2769 = vmatpush3.bf16.msra.mxu0 %v3181_v16  ;;  %v3208_v61 = vld [vmem:[%s4199_s2 + $0x188] sm:$0xff]   ;;  %v3210_v63 = vld [vmem:[%s4199_s2 + $0x110] sm:$0xff]   ;;  %v3215_v3 = vld [vmem:[%s4199_s2 + $0x1d8] sm:$0xff]  }
  0x11   :  { %2770 = vmatprep.subr.bf16.mxu0 %v3184_v19  ;;  %658 = vmatprep.mubr.bf16.mxu0 %v222_v49  ;;  %v232_v54 = vcombine.high %v222_v49, %v222_v49  ;;  %v229_v56 = vrot.slane %v201_v51, %v3578_v37  ;;  %v3212_v2 = vld [vmem:[%s4199_s2 + $0x190] sm:$0xff]   ;;  %v3214_v4 = vld [vmem:[%s4199_s2 + $0x118] sm:$0xff]   ;;  %v3217_v5 = vld [vmem:[%s4199_s2 + $0x160] sm:$0xff]  }
  0x12   :  { %2791 = vmatpush3.bf16.msra.mxu1 %v3183_v18  ;;  %v3216_v6 = vld [vmem:[%s4199_s2 + $0x198] sm:$0xff]   ;;  %v3219_v7 = vld [vmem:[%s4199_s2 + $0x1e0] sm:$0xff]   ;;  %v3221_v9 = vld [vmem:[%s4199_s2 + $0x168] sm:$0xff]  }
  0x13   :  { %2792 = vmatprep.subr.bf16.mxu1 %v3186_v21  ;;  %698 = vmatprep.mubr.bf16.mxu1 %v232_v54  ;;  %v233_v59 = vcombine.high %v229_v56, %v229_v56  ;;  %v3218_v8 = vld [vmem:[%s4199_s2 + $0x120] sm:$0xff]   ;;  %v3223_v11 = vld [vmem:[%s4199_s2 + $0x1e8] sm:$0xff]   ;;  %v3225_v13 = vld [vmem:[%s4199_s2 + $0x170] sm:$0xff]   ;;  %v215_v21 = vrot.slane %v3601_v48, %v3578_v37 }
  0x14   :  { %2771 = vmatpush3.bf16.msra.mxu0 %v3185_v20  ;;  %v3220_v10 = vld [vmem:[%s4199_s2 + $0x1a0] sm:$0xff]   ;;  %v3222_v12 = vld [vmem:[%s4199_s2 + $0x128] sm:$0xff]   ;;  %v3227_v15 = vld [vmem:[%s4199_s2 + $0x1f0] sm:$0xff]  }
  0x15   :  { %2772 = vmatprep.subr.bf16.mxu0 %v3188_v23  ;;  %v3224_v14 = vld [vmem:[%s4199_s2 + $0x1a8] sm:$0xff]   ;;  %v3226_v16 = vld [vmem:[%s4199_s2 + $0x130] sm:$0xff]   ;;  %v3229_v17 = vld [vmem:[%s4199_s2 + $0x178] sm:$0xff]   ;;  %v231_v24 = vcombine.high %v215_v21, %v215_v21 }
  0x16   :  { %2793 = vmatpush3.bf16.msra.mxu1 %v3187_v22  ;;  %v3228_v18 = vld [vmem:[%s4199_s2 + $0x1b0] sm:$0xff]   ;;  %v3231_v19 = vld [vmem:[%s4199_s2 + $0x1f8] sm:$0xff]   ;;  %v3233_v23 = vld [vmem:[%s4201_s4] sm:$0xff]  }
  0x17   :  { %2794 = vmatprep.subr.bf16.mxu1 %v3190_v28  ;;  %v3230_v20 = vld [vmem:[%s4199_s2 + $0x138] sm:$0xff]   ;;  %v3235_v28 = vld [vmem:[%s4201_s4 + $0x10] sm:$0xff]  }
  0x18   :  { %2773 = vmatpush3.bf16.msra.mxu0 %v3189_v27  ;;  %v3232_v22 = vld [vmem:[%s4199_s2 + $0x1b8] sm:$0xff]   ;;  %v3234_v27 = vld [vmem:[%s4201_s4 + $0x8] sm:$0xff]  }
  0x19   :  { %2774 = vmatprep.subr.bf16.mxu0 %v3192_v30  ;;  %v789_v30 = vand.u32 127, %v189_v26  ;;  %v3238_v26 = vld [vmem:[%s4202_s5 + $0x8] sm:$0xff]  }
  0x1a   :  { %2795 = vmatpush3.bf16.msra.mxu1 %v3191_v29  ;;  %v3236_v29 = vld [vmem:[%s4201_s4 + $0x18] sm:$0xff]  }
  0x1b   :  { %2796 = vmatprep.subr.bf16.mxu1 %v3194_v34 }
  0x1c   :  { %2775 = vmatpush3.bf16.msra.mxu0 %v3193_v33 }
  0x1d   :  { %2776 = vmatprep.subr.bf16.mxu0 %v3196_v36  ;;  %v3237_v36 = vld [vmem:[%s4202_s5] sm:$0xff]  }
  0x1e   :  { %2797 = vmatpush3.bf16.msra.mxu1 %v3195_v35 }
  0x1f   :  { %2798 = vmatprep.subr.bf16.mxu1 %v3198_v39 }
  0x20   :  { %2777 = vmatpush3.bf16.msra.mxu0 %v3197_v38  ;;  %v2631_v38 = vld [vmem:[%s4204_s3] ss:$0 sm:$0xff] }
  0x21   :  { %2806 = vmatprep.subr.bf16.mxu0 %v3201_v44 }
  0x22   :  { %2799 = vmatpush3.bf16.msra.mxu1 %v3199_v40 }
  0x23   :  { %2828 = vmatprep.subr.bf16.mxu1 %v3203_v47  ;;  %659 = vmatmul.mubr.bf16.vlgmr.msra.gmra.mrb[0].mxu0 %v208_v46 }
  0x24   :  { %2807 = vmatpush3.bf16.msra.mxu0 %v3202_v50  ;;  %738 = vmatprep.mubr.bf16.mxu0 %v229_v56 }
  0x25   :  { %699 = vmatmul.mubr.bf16.vlgmr.msra.gmra.mrb[0].mxu1 %v230_v52  ;;  %2808 = vmatprep.subr.bf16.mxu0 %v3205_v53 }
  0x26   :  { %2829 = vmatpush3.bf16.msra.mxu1 %v3204_v55  ;;  %778 = vmatprep.mubr.bf16.mxu1 %v233_v59 }
  0x27   :  { %2830 = vmatprep.subr.bf16.mxu1 %v3207_v57 }
  0x28   :  { %2809 = vmatpush3.bf16.msra.mxu0 %v3206_v58 }
  0x29   :  { %2810 = vmatprep.subr.bf16.mxu0 %v3209_v60 }
  0x2a   :  { %2831 = vmatpush3.bf16.msra.mxu1 %v3208_v61 }
  0x2b   :  { %2832 = vmatprep.subr.bf16.mxu1 %v3211_v62 }
  0x2c   :  { %2811 = vmatpush3.bf16.msra.mxu0 %v3210_v63 }
  0x2d   :  { %2812 = vmatprep.subr.bf16.mxu0 %v3213_v1 }
  0x2e   :  { %2833 = vmatpush3.bf16.msra.mxu1 %v3212_v2 }
  0x2f   :  { %2834 = vmatprep.subr.bf16.mxu1 %v3215_v3 }
  0x30   :  { %2813 = vmatpush3.bf16.msra.mxu0 %v3214_v4 }
  0x31   :  { %2814 = vmatprep.subr.bf16.mxu0 %v3217_v5 }
  0x32   :  { %2835 = vmatpush3.bf16.msra.mxu1 %v3216_v6 }
  0x33   :  { %2836 = vmatprep.subr.bf16.mxu1 %v3219_v7 }
  0x34   :  { %2815 = vmatpush3.bf16.msra.mxu0 %v3218_v8  ;;  %v3739_v8 = vld [vmem:[%s4203_s6] sm:$0xff]  }
  0x35   :  { %2816 = vmatprep.subr.bf16.mxu0 %v3221_v9 }
  0x36   :  { %2837 = vmatpush3.bf16.msra.mxu1 %v3220_v10  ;;  %v3747_v10 = vld [vmem:[%s4203_s6 + $0x8] sm:$0xff]  }
  0x37   :  { %2838 = vmatprep.subr.bf16.mxu1 %v3223_v11  ;;  %v2703_v11 = vld [vmem:[%s4205_s7] ss:$0 sm:$0xff]  ;;  %s3407_s7 = smov 32  }
  0x38   :  { %2817 = vmatpush3.bf16.msra.mxu0 %v3222_v12 }
  0x39   :  { %2818 = vmatprep.subr.bf16.mxu0 %v3225_v13 }
  0x3a   :  { %2839 = vmatpush3.bf16.msra.mxu1 %v3224_v14 }
  0x3b   :  { %2840 = vmatprep.subr.bf16.mxu1 %v3227_v15 }
  0x3c   :  { %2819 = vmatpush3.bf16.msra.mxu0 %v3226_v16 }
  0x3d   :  { %2820 = vmatprep.subr.bf16.mxu0 %v3229_v17 }
  0x3e   :  { %2841 = vmatpush3.bf16.msra.mxu1 %v3228_v18 }
  0x3f   :  { %2842 = vmatprep.subr.bf16.mxu1 %v3231_v19 }
  0x40   :  { %2821 = vmatpush3.bf16.msra.mxu0 %v3230_v20 }
  0x41   :  { %2941 = vmatprep.subr.bf16.mxu0 %v3404_v25 }
  0x42   :  { %2843 = vmatpush3.bf16.msra.mxu1 %v3232_v22 }
  0x43   :  { %739 = vmatmul.mubr.bf16.vlgmr.msra.gmra.mrb[4].mxu0 %v215_v21  ;;  %2953 = vmatprep.subr.bf16.mxu1 %v3237_v36 }
  0x44   :  { %2942 = vmatpush3.bf16.msra.mxu0 %v3233_v23  ;;  %2949 = vmatprep.mubr.msk.bf16.mxu0 %vm3405_vm0, %v3404_v25 }
  0x45   :  { %779 = vmatmul.mubr.bf16.vlgmr.msra.gmra.mrb[4].mxu1 %v231_v24  ;;  %2943 = vmatprep.subr.bf16.mxu0 %v3404_v25 }
  0x46   :  { %2954 = vmatpush3.bf16.msra.mxu1 %v3237_v36  ;;  %v3785_v36 = vld [vmem:[%s4206_s8 + $0x8] sm:$0xff]  }
  0x47   :  { %2955 = vmatprep.subr.bf16.mxu1 %v3238_v26 }
  0x48   :  { %2944 = vmatpush3.bf16.msra.mxu0 %v3234_v27 }
  0x49   :  { %2945 = vmatprep.subr.bf16.mxu0 %v3404_v25 }
  0x4a   :  { %2956 = vmatpush3.bf16.msra.mxu1 %v3238_v26  ;;  %v3792_v26 = vld [vmem:[%s4206_s8 + $0x10] sm:$0xff]  }
  0x4b   :  { %2961 = vmatprep.subr.bf16.mxu1 %v3404_v25 }
  0x4c   :  { %2946 = vmatpush3.bf16.msra.mxu0 %v3235_v28 }
  0x4d   :  { %2947 = vmatprep.subr.bf16.mxu0 %v3404_v25 }
  0x50   :  { %2948 = vmatpush3.bf16.msra.mxu0 %v3236_v29 }
  0x51   :  { %2969 = vmatprep.subr.bf16.mxu0 %v3404_v25 }
  0x81   :  { %v792_v31 = vpop.permute.xlu0 %791 }
  0x82   :  { %vm796_vm1 = vcmp.eq.s32.totalorder %v789_v30, %v792_v31 }
  0x83   :  { %v2696_v33 = vsel %vm796_vm1, 1.0, %v3404_v25 }
  0x85   :  { %v795_v32 = vpop.permute.xlu0 %794 }
  0x86   :  { %vm797_vm2 = vcmp.eq.s32.totalorder %v789_v30, %v795_v32 }
  0x87   :  { %v2697_v34 = vsel %vm797_vm2, 1.0, %v3404_v25 }
  0x88   :  { %v802_v35 = vpack.c.bf16 %v2697_v34, %v2696_v33 }
  0x8a   :  { %2950 = vmatmul.mubr.msk.bf16.vlgmr.msra.gmra.mrb[8].mxu0 %vm835_vm3, %v802_v35  ;;  %v3779_v35 = vld [vmem:[%s4206_s8] sm:$0xff]  }
  0x8b   :  { %2977 = vmatprep.mubr.msk.bf16.mxu0 %vm3405_vm0, %v3404_v25  ;;  %2970 = vmatpush3.bf16.msra.mxu0 %v3779_v35 }
  0x8c   :  { %2971 = vmatprep.subr.bf16.mxu0 %v3404_v25 }
  0x8f   :  { %2972 = vmatpush3.bf16.msra.mxu0 %v3785_v36 }
  0x90   :  { %2973 = vmatprep.subr.bf16.mxu0 %v3404_v25 }
  0x93   :  { %2974 = vmatpush3.bf16.msra.mxu0 %v3792_v26 }
  0x94   :  { %2975 = vmatprep.subr.bf16.mxu0 %v3404_v25 }
  0xf6   :  { %v2778_v37 = vpop.f32.mrb[0].mxu0 }
  0xf7   :  { %v2779_v39 = vpop.f32.mrb[1].mxu0 }
  0xf8   :  { %v2780_v40 = vadd.f32 %v2779_v39, %v2778_v37  ;;  %v2781_v41 = vpop.f32.mrb[2].mxu0  ;;  %v2800_v42 = vpop.f32.mrb[0].mxu1 }
  0xf9   :  { %v2782_v43 = vpop.f32.mrb[3].mxu0  ;;  %v2801_v44 = vpop.f32.mrb[1].mxu1 }
  0xfa   :  { %v661_v45 = vadd.f32 %v2780_v40, %v2631_v38  ;;  %v2802_v46 = vadd.f32 %v2801_v44, %v2800_v42  ;;  %v2803_v47 = vpop.f32.mrb[2].mxu1  ;;  %v3801_v38 = vld [vmem:[%s4206_s8 + $0x18] sm:$0xff]  }
  0xfb   :  { %v2804_v48 = vpop.f32.mrb[3].mxu1  ;;  %2976 = vmatpush3.bf16.msra.mxu0 %v3801_v38 }
  0xfc   :  { %v701_v49 = vadd.f32 %v2802_v46, %v661_v45  ;;  %3001 = vmatprep.subr.bf16.mxu0 %v3404_v25  ;;  %v3829_v46 = vld [vmem:[%s4207_s9] ss:$0 sm:$0xff] }
 0x116   :  { %v2822_v50 = vpop.f32.mrb[4].mxu0 }
 0x117   :  { %v2823_v51 = vpop.f32.mrb[5].mxu0 }
 0x118   :  { %v2824_v52 = vadd.f32 %v2823_v51, %v2822_v50  ;;  %v2844_v53 = vpop.f32.mrb[4].mxu1  ;;  %v2825_v54 = vpop.f32.mrb[6].mxu0 }
 0x119   :  { %v2845_v55 = vpop.f32.mrb[5].mxu1  ;;  %v2826_v56 = vpop.f32.mrb[7].mxu0 }
 0x11a   :  { %v741_v57 = vadd.f32 %v2824_v52, %v701_v49  ;;  %v2846_v58 = vadd.f32 %v2845_v55, %v2844_v53  ;;  %v2847_v59 = vpop.f32.mrb[6].mxu1 }
 0x11b   :  { %v2848_v60 = vpop.f32.mrb[7].mxu1 }
 0x11c   :  { %v781_v61 = vadd.f32 %v2846_v58, %v741_v57 }
 0x15d   :  { %v873_v62 = vpop.f32.mrb[8].mxu0 }
 0x15e   :  { %v883_v63 = vrot.slane %v873_v62, 6  ;;  %v2951_v1 = vpop.f32.mrb[9].mxu0 }
 0x15f   :  { %v876_v2 = vpop.f32.mrb[10].mxu0 }
 0x160   :  { %v889_v3 = vsel %vm882_vm4, %v781_v61, %v883_v63  ;;  %v884_v4 = vrot.slane %v876_v2, 6  ;;  %v2952_v5 = vpop.f32.mrb[11].mxu0 }
 0x162   :  { %v885_v6 = vsel %vm882_vm4, %v883_v63, %v884_v4  ;;  %v891_v9 = vpack.c.bf16 %v884_v4, %v884_v4 }
 0x163   :  { %v890_v7 = vpack.c.bf16 %v885_v6, %v889_v3 }
 0x165   :  { %2957 = vmatprep.mubr.msk.bf16.mxu1 %vm915_vm5, %v890_v7 }
 0x166   :  { %2958 = vmatmul.mubr.msk.bf16.vlgmr.msra.gmra.mrb[8].mxu1 %vm915_vm5, %v891_v9 }
 0x167   :  { %2962 = vmatpush3.bf16.msra.mxu1 %v3739_v8  ;;  %2965 = vmatprep.mubr.msk.bf16.mxu1 %vm3405_vm0, %v3404_v25 }
 0x168   :  { %2963 = vmatprep.subr.bf16.mxu1 %v3404_v25 }
 0x16b   :  { %2964 = vmatpush3.bf16.msra.mxu1 %v3747_v10 }
 0x16c   :  { %2981 = vmatprep.subr.bf16.mxu1 %v3404_v25 }
 0x16e   :  { %2966 = vmatmul.mubr.bf16.vlgmr.msra.gmra.mrb[12].mxu1 %v3402_v0 }
 0x16f   :  { %2982 = vmatpush3.bf16.msra.mxu1 %v3739_v8  ;;  %2985 = vmatprep.mubr.msk.bf16.mxu1 %vm3405_vm0, %v3404_v25 }
 0x170   :  { %2983 = vmatprep.subr.bf16.mxu1 %v3404_v25 }
 0x173   :  { %2984 = vmatpush3.bf16.msra.mxu1 %v3747_v10 }
 0x174   :  { %2989 = vmatprep.subr.bf16.mxu1 %v3404_v25 }
 0x239   :  { %v2959_v12 = vpop.f32.mrb[8].mxu1 }
 0x23a   :  { %v3764_v13 = vadd.f32 %v2959_v12, %v2703_v11  ;;  %v956_v14 = vpop.f32.mrb[9].mxu1 }
 0x23b   :  { %v2960_v0 = vpop.f32.mrb[10].mxu1  ;;  %v3768_v17 = vadd.f32 %v2703_v11, %v956_v14 }
 0x23c   :  { %v959_v15 = vpop.f32.mrb[11].mxu1 }
 0x23d   :  { %v3766_v16 = vadd.f32 %v2703_v11, %v959_v15 }
 0x241   :  { %v1023_v18 = vpop.f32.mrb[12].mxu1 }
 0x242   :  { %v1029_v19 = vadd.f32 %v1023_v18, %v3768_v17  ;;  %v2967_v20 = vpop.f32.mrb[13].mxu1 }
 0x243   :  { %v1026_v21 = vpop.f32.mrb[14].mxu1 }
 0x244   :  { %3251 = vtanh.f32 %v1029_v19  ;;  %v2968_v22 = vpop.f32.mrb[15].mxu1  ;;  %v2710_v24 = vmul.f32 -1.442695, %v1029_v19 }
 0x246   :  { %3253 = vpow2.f32 %v2710_v24 }
 0x24e   :  { %v3252_v23 = vpop.eup %3251 }
 0x24f   :  { %1039 = vrot.lane.b32.xlu1 %v3252_v23, %s3406_s22 }
 0x250   :  { %v3254_v27 = vpop.eup %3253 }
 0x251   :  { %v1033_v28 = vadd.f32 1.0, %v3254_v27 }
 0x253   :  { %3255 = vrcp.f32 %v1033_v28 }
 0x25d   :  { %v3256_v29 = vpop.eup %3255 }
 0x25e   :  { %v1037_v32 = vmul.f32 0.0, %v3256_v29 }
 0x2c1   :  { %v1040_v30 = vpop.permute.xlu1 %1039 }
 0x2c2   :  { %v1042_v31 = vmul.f32 %v3256_v29, %v1040_v30 }
 0x2c4   :  { %1044 = vrot.lane.b32.xlu1 %v1042_v31, %s3407_s7 }
 0x336   :  { %v1045_v33 = vpop.permute.xlu1 %1044 }
 0x337   :  { %v3773_v34 = vadd.f32 %v1045_v33, %v1037_v32 }
 0x339   :  { %3257 = vtanh.f32 %v3773_v34  ;;  %v1225_v11 = vrot.slane %v3773_v34, 6 }
 0x343   :  { %v3258_v37 = vpop.eup %3257 }
 0x344   :  { %1050 = vrot.lane.b32.xlu0 %v3258_v37, %s3406_s22 }
 0x3b6   :  { %v1051_v39 = vpop.permute.xlu0 %1050 }
 0x3b7   :  { %v1053_v40 = vmul.f32 %v3256_v29, %v1051_v39 }
 0x3b9   :  { %v1166_v41 = vpack.c.bf16 %v1053_v40, %v1053_v40  ;;  %1055 = vrot.lane.b32.xlu1 %v1053_v40, %s3407_s7 }
 0x3bb   :  { %1168 = vrot.lane.b32.xlu0 %v1166_v41, %s3407_s7 }
 0x42b   :  { %v1056_v42 = vpop.permute.xlu1 %1055 }
 0x42c   :  { %v1058_v43 = vsel %vm915_vm5, %v1056_v42, 0.0 }
 0x42d   :  { %v1059_v44 = vpack.c.bf16 %v1058_v43, %v1058_v43  ;;  %v1169_v45 = vpop.permute.xlu0 %1168 }
 0x42e   :  { %2986 = vmatmul.mubr.msk.bf16.vlgmr.msra.gmra.mrb[16].mxu1 %vm915_vm5, %v1169_v45 }
 0x42f   :  { %2978 = vmatmul.mubr.msk.bf16.vlgmr.msra.gmra.mrb[12].mxu0 %vm835_vm3, %v1059_v44  ;;  %2990 = vmatpush3.bf16.msra.mxu1 %v3779_v35 }
 0x430   :  { %2991 = vmatprep.subr.bf16.mxu1 %v3404_v25  ;;  %3002 = vmatpush3.bf16.msra.mxu0 %v3739_v8 }
 0x431   :  { %3003 = vmatprep.subr.bf16.mxu0 %v3404_v25  ;;  %3005 = vmatprep.mubr.msk.bf16.mxu0 %vm3405_vm0, %v3404_v25 }
 0x432   :  { %2997 = vmatprep.mubr.msk.bf16.mxu1 %vm3405_vm0, %v3404_v25 }
 0x433   :  { %2992 = vmatpush3.bf16.msra.mxu1 %v3785_v36 }
 0x434   :  { %2993 = vmatprep.subr.bf16.mxu1 %v3404_v25  ;;  %3004 = vmatpush3.bf16.msra.mxu0 %v3747_v10 }
 0x435   :  { %3009 = vmatprep.subr.bf16.mxu0 %v3404_v25 }
 0x437   :  { %2994 = vmatpush3.bf16.msra.mxu1 %v3792_v26 }
 0x438   :  { %2995 = vmatprep.subr.bf16.mxu1 %v3404_v25 }
 0x43b   :  { %2996 = vmatpush3.bf16.msra.mxu1 %v3801_v38 }
 0x43c   :  { %3021 = vmatprep.subr.bf16.mxu1 %v3404_v25 }
 0x501   :  { %v1207_v47 = vpop.f32.mrb[16].mxu1 }
 0x502   :  { %v1214_v48 = vrot.slane %v1207_v47, 6  ;;  %v1136_v49 = vpop.f32.mrb[12].mxu0  ;;  %v2987_v50 = vpop.f32.mrb[17].mxu1 }
 0x503   :  { %v1137_v51 = vadd.f32 %v3829_v46, %v1136_v49  ;;  %v2979_v52 = vpop.f32.mrb[13].mxu0  ;;  %v1210_v53 = vpop.f32.mrb[18].mxu1 }
 0x504   :  { %v1216_v54 = vadd.f32 %v1214_v48, %v3768_v17  ;;  %v1139_v55 = vpop.f32.mrb[14].mxu0  ;;  %v2988_v56 = vpop.f32.mrb[19].mxu1 }
 0x505   :  { %3259 = vtanh.f32 %v1137_v51  ;;  %v2980_v57 = vpop.f32.mrb[15].mxu0  ;;  %v2717_v60 = vmul.f32 -1.442695, %v1137_v51 }
 0x506   :  { %3261 = vtanh.f32 %v1216_v54  ;;  %v2719_v61 = vmul.f32 -1.442695, %v1216_v54 }
 0x507   :  { %3263 = vpow2.f32 %v2717_v60 }
 0x508   :  { %3265 = vpow2.f32 %v2719_v61 }
 0x50f   :  { %v3260_v58 = vpop.eup %3259 }
 0x510   :  { %v3262_v59 = vpop.eup %3261  ;;  %1151 = vrot.lane.b32.xlu1 %v3260_v58, %s3406_s22 }
 0x511   :  { %1229 = vrot.lane.b32.xlu0 %v3262_v59, %s3406_s22  ;;  %v3264_v62 = vpop.eup %3263 }
 0x512   :  { %v3266_v63 = vpop.eup %3265  ;;  %v1145_v1 = vadd.f32 1.0, %v3264_v62 }
 0x513   :  { %v1220_v2 = vadd.f32 1.0, %v3266_v63 }
 0x514   :  { %3267 = vrcp.f32 %v1145_v1 }
 0x515   :  { %3269 = vrcp.f32 %v1220_v2 }
 0x51e   :  { %v3268_v3 = vpop.eup %3267 }
 0x51f   :  { %v3270_v5 = vpop.eup %3269  ;;  %v1149_v12 = vmul.f32 0.0, %v3268_v3 }
 0x520   :  { %v1227_v0 = vmul.f32 %v3270_v5, %v1225_v11 }
 0x582   :  { %v1152_v4 = vpop.permute.xlu1 %1151 }
 0x583   :  { %v1154_v6 = vmul.f32 %v3268_v3, %v1152_v4  ;;  %v1230_v7 = vpop.permute.xlu0 %1229 }
 0x584   :  { %v1232_v9 = vmul.f32 %v3270_v5, %v1230_v7 }
 0x585   :  { %1156 = vrot.lane.b32.xlu1 %v1154_v6, %s3407_s7 }
 0x586   :  { %1234 = vrot.lane.b32.xlu0 %v1232_v9, %s3407_s7 }
 0x5f7   :  { %v1157_v14 = vpop.permute.xlu1 %1156 }
 0x5f8   :  { %v3838_v15 = vadd.f32 %v1157_v14, %v1149_v12  ;;  %v1235_v18 = vpop.permute.xlu0 %1234 }
 0x5f9   :  { %v3840_v19 = vadd.f32 %v1235_v18, %v1227_v0 }
 0x5fa   :  { %3271 = vtanh.f32 %v3838_v15 }
 0x5fb   :  { %3273 = vtanh.f32 %v3840_v19 }
 0x604   :  { %v3272_v20 = vpop.eup %3271 }
 0x605   :  { %v3274_v21 = vpop.eup %3273  ;;  %1162 = vrot.lane.b32.xlu1 %v3272_v20, %s3406_s22 }
 0x606   :  { %1240 = vrot.lane.b32.xlu0 %v3274_v21, %s3406_s22 }
 0x677   :  { %v1163_v22 = vpop.permute.xlu1 %1162 }
 0x678   :  { %v3846_v23 = vmul.f32 %v3268_v3, %v1163_v22  ;;  %v1241_v24 = vpop.permute.xlu0 %1240  ;;  %v1384_v3 = vrot.slane %v3840_v19, 6 }
 0x679   :  { %v1243_v27 = vmul.f32 %v3270_v5, %v1241_v24 }
 0x67a   :  { %v1249_v28 = vrot.slane %v3846_v23, 6 }
 0x67b   :  { %v1324_v29 = vpack.c.bf16 %v1243_v27, %v1243_v27  ;;  %1245 = vrot.lane.b32.xlu1 %v1243_v27, %s3407_s7 }
 0x67c   :  { %1250 = vrot.lane.b32.xlu0 %v1249_v28, %s3406_s22 }
 0x67d   :  { %v1326_v30 = vrot.slane %v1324_v29, 1 }
 0x67f   :  { %1327 = vrot.lane.b32.xlu1 %v1326_v30, %s3407_s7 }
 0x6ed   :  { %v1246_v31 = vpop.permute.xlu1 %1245 }
 0x6ee   :  { %v1251_v32 = vpop.permute.xlu0 %1250 }
 0x6ef   :  { %v1253_v33 = vsel %vm915_vm5, %v1246_v31, %v1251_v32 }
 0x6f0   :  { %v1254_v34 = vpack.c.bf16 %v1253_v33, %v1253_v33 }
 0x6f1   :  { %v1328_v37 = vpop.permute.xlu1 %1327 }
 0x6f2   :  { %v1256_v39 = vrot.slane %v1254_v34, 1  ;;  %3006 = vmatmul.mubr.msk.bf16.vlgmr.msra.gmra.mrb[16].mxu0 %vm915_vm5, %v1328_v37 }
 0x6f3   :  { %3010 = vmatpush3.bf16.msra.mxu0 %v3779_v35  ;;  %3017 = vmatprep.mubr.msk.bf16.mxu0 %vm3405_vm0, %v3404_v25 }
 0x6f4   :  { %2998 = vmatmul.mubr.msk.bf16.vlgmr.msra.gmra.mrb[20].mxu1 %vm835_vm3, %v1256_v39  ;;  %3011 = vmatprep.subr.bf16.mxu0 %v3404_v25 }
 0x6f5   :  { %3022 = vmatpush3.bf16.msra.mxu1 %v3739_v8  ;;  %3025 = vmatprep.mubr.msk.bf16.mxu1 %vm3405_vm0, %v3404_v25 }
 0x6f6   :  { %3023 = vmatprep.subr.bf16.mxu1 %v3404_v25 }
 0x6f7   :  { %3012 = vmatpush3.bf16.msra.mxu0 %v3785_v36 }
 0x6f8   :  { %3013 = vmatprep.subr.bf16.mxu0 %v3404_v25 }
 0x6f9   :  { %3024 = vmatpush3.bf16.msra.mxu1 %v3747_v10 }
 0x6fa   :  { %3029 = vmatprep.subr.bf16.mxu1 %v3404_v25 }
 0x6fb   :  { %3014 = vmatpush3.bf16.msra.mxu0 %v3792_v26 }
 0x6fc   :  { %3015 = vmatprep.subr.bf16.mxu0 %v3404_v25 }
 0x6ff   :  { %3016 = vmatpush3.bf16.msra.mxu0 %v3801_v38 }
 0x700   :  { %3041 = vmatprep.subr.bf16.mxu0 %v3404_v25 }
 0x7c5   :  { %v1366_v40 = vpop.f32.mrb[16].mxu0 }
 0x7c6   :  { %v1373_v41 = vrot.slane %v1366_v40, 4  ;;  %v3007_v42 = vpop.f32.mrb[17].mxu0 }
 0x7c7   :  { %v1294_v43 = vpop.f32.mrb[20].mxu1  ;;  %v1369_v44 = vpop.f32.mrb[18].mxu0 }
 0x7c8   :  { %v1375_v45 = vadd.f32 %v1373_v41, %v3768_v17  ;;  %v1295_v47 = vadd.f32 %v3829_v46, %v1294_v43  ;;  %v2999_v48 = vpop.f32.mrb[21].mxu1  ;;  %v3008_v49 = vpop.f32.mrb[19].mxu0 }
 0x7c9   :  { %v1297_v50 = vpop.f32.mrb[22].mxu1 }
 0x7ca   :  { %3275 = vtanh.f32 %v1375_v45  ;;  %v3000_v51 = vpop.f32.mrb[23].mxu1  ;;  %v2723_v54 = vmul.f32 -1.442695, %v1375_v45  ;;  %v2721_v55 = vmul.f32 -1.442695, %v1295_v47 }
 0x7cb   :  { %3277 = vtanh.f32 %v1295_v47 }
 0x7cc   :  { %3279 = vpow2.f32 %v2723_v54 }
 0x7cd   :  { %3281 = vpow2.f32 %v2721_v55 }
 0x7d4   :  { %v3276_v52 = vpop.eup %3275 }
 0x7d5   :  { %v3278_v53 = vpop.eup %3277  ;;  %1388 = vrot.lane.b32.xlu1 %v3276_v52, %s3406_s22 }
 0x7d6   :  { %1309 = vrot.lane.b32.xlu0 %v3278_v53, %s3406_s22  ;;  %v3280_v56 = vpop.eup %3279 }
 0x7d7   :  { %v3282_v57 = vpop.eup %3281  ;;  %v1379_v58 = vadd.f32 1.0, %v3280_v56 }
 0x7d8   :  { %v1303_v59 = vadd.f32 1.0, %v3282_v57 }
 0x7d9   :  { %3283 = vrcp.f32 %v1379_v58 }
 0x7da   :  { %3285 = vrcp.f32 %v1303_v59 }
 0x7e3   :  { %v3284_v60 = vpop.eup %3283 }
 0x7e4   :  { %v3286_v62 = vpop.eup %3285  ;;  %v1386_v4 = vmul.f32 %v3284_v60, %v1384_v3 }
 0x7e5   :  { %v1307_v5 = vmul.f32 %v3286_v62, %v3838_v15 }
 0x847   :  { %v1389_v61 = vpop.permute.xlu1 %1388 }
 0x848   :  { %v1310_v63 = vpop.permute.xlu0 %1309  ;;  %v1391_v1 = vmul.f32 %v3284_v60, %v1389_v61 }
 0x849   :  { %v1312_v2 = vmul.f32 %v3286_v62, %v1310_v63 }
 0x84a   :  { %1393 = vrot.lane.b32.xlu1 %v1391_v1, %s3407_s7 }
 0x84b   :  { %1314 = vrot.lane.b32.xlu0 %v1312_v2, %s3407_s7 }
 0x8bc   :  { %v1394_v6 = vpop.permute.xlu1 %1393 }
 0x8bd   :  { %v1315_v7 = vpop.permute.xlu0 %1314  ;;  %v3879_v9 = vadd.f32 %v1394_v6, %v1386_v4 }
 0x8be   :  { %v3881_v11 = vadd.f32 %v1315_v7, %v1307_v5 }
 0x8bf   :  { %3287 = vtanh.f32 %v3879_v9 }
 0x8c0   :  { %3289 = vtanh.f32 %v3881_v11 }
 0x8c9   :  { %v3288_v12 = vpop.eup %3287 }
 0x8ca   :  { %v3290_v14 = vpop.eup %3289  ;;  %1399 = vrot.lane.b32.xlu1 %v3288_v12, %s3406_s22 }
 0x8cb   :  { %1320 = vrot.lane.b32.xlu0 %v3290_v14, %s3406_s22 }
 0x93c   :  { %v1400_v0 = vpop.permute.xlu1 %1399 }
 0x93d   :  { %v1321_v18 = vpop.permute.xlu0 %1320  ;;  %v1402_v19 = vmul.f32 %v3284_v60, %v1400_v0  ;;  %v1543_v60 = vrot.slane %v3879_v9, 6 }
 0x93e   :  { %v3887_v15 = vmul.f32 %v3286_v62, %v1321_v18 }
 0x93f   :  { %v1483_v20 = vpack.c.bf16 %v1402_v19, %v1402_v19  ;;  %1404 = vrot.lane.b32.xlu0 %v1402_v19, %s3407_s7 }
 0x940   :  { %v1408_v21 = vrot.slane %v3887_v15, 4  ;;  %v2424_v9 = vrot.slane %v3887_v15, 6 }
 0x941   :  { %v1485_v22 = vrot.slane %v1483_v20, 2 }
 0x942   :  { %1409 = vrot.lane.b32.xlu1 %v1408_v21, %s3406_s22  ;;  %v2436_v20 = vsel %vm882_vm4, %v3846_v23, %v2424_v9 }
 0x943   :  { %1486 = vrot.lane.b32.xlu0 %v1485_v22, %s3407_s7 }
 0x9b1   :  { %v1405_v24 = vpop.permute.xlu0 %1404 }
 0x9b4   :  { %v1410_v27 = vpop.permute.xlu1 %1409 }
 0x9b5   :  { %v1412_v28 = vsel %vm915_vm5, %v1405_v24, %v1410_v27  ;;  %v1487_v29 = vpop.permute.xlu0 %1486 }
 0x9b6   :  { %v1413_v30 = vpack.c.bf16 %v1412_v28, %v1412_v28  ;;  %3026 = vmatmul.mubr.msk.bf16.vlgmr.msra.gmra.mrb[24].mxu1 %vm915_vm5, %v1487_v29 }
 0x9b7   :  { %3030 = vmatpush3.bf16.msra.mxu1 %v3779_v35  ;;  %3037 = vmatprep.mubr.msk.bf16.mxu1 %vm3405_vm0, %v3404_v25 }
 0x9b8   :  { %v1415_v31 = vrot.slane %v1413_v30, 2  ;;  %3031 = vmatprep.subr.bf16.mxu1 %v3404_v25 }
 0x9ba   :  { %3018 = vmatmul.mubr.msk.bf16.vlgmr.msra.gmra.mrb[20].mxu0 %vm835_vm3, %v1415_v31 }
 0x9bb   :  { %3032 = vmatpush3.bf16.msra.mxu1 %v3785_v36  ;;  %3042 = vmatpush3.bf16.msra.mxu0 %v3739_v8 }
 0x9bc   :  { %3033 = vmatprep.subr.bf16.mxu1 %v3404_v25  ;;  %3043 = vmatprep.subr.bf16.mxu0 %v3404_v25 }
 0x9bd   :  { %3045 = vmatprep.mubr.msk.bf16.mxu0 %vm3405_vm0, %v3404_v25 }
 0x9bf   :  { %3034 = vmatpush3.bf16.msra.mxu1 %v3792_v26  ;;  %3044 = vmatpush3.bf16.msra.mxu0 %v3747_v10 }
 0x9c0   :  { %3035 = vmatprep.subr.bf16.mxu1 %v3404_v25  ;;  %3049 = vmatprep.subr.bf16.mxu0 %v3404_v25 }
 0x9c3   :  { %3036 = vmatpush3.bf16.msra.mxu1 %v3801_v38 }
 0x9c4   :  { %3061 = vmatprep.subr.bf16.mxu1 %v3404_v25 }
 0xa89   :  { %v1525_v32 = vpop.f32.mrb[24].mxu1 }
 0xa8a   :  { %v1532_v33 = vrot.slane %v1525_v32, 2  ;;  %v3027_v34 = vpop.f32.mrb[25].mxu1 }
 0xa8b   :  { %v1528_v37 = vpop.f32.mrb[26].mxu1 }
 0xa8c   :  { %v1534_v39 = vadd.f32 %v1532_v33, %v3768_v17  ;;  %v3028_v40 = vpop.f32.mrb[27].mxu1 }
 0xa8d   :  { %v1453_v41 = vpop.f32.mrb[20].mxu0 }
 0xa8e   :  { %3291 = vtanh.f32 %v1534_v39  ;;  %v1454_v42 = vadd.f32 %v3829_v46, %v1453_v41  ;;  %v3019_v43 = vpop.f32.mrb[21].mxu0  ;;  %v2727_v49 = vmul.f32 -1.442695, %v1534_v39 }
 0xa8f   :  { %v1456_v44 = vpop.f32.mrb[22].mxu0 }
 0xa90   :  { %v3020_v45 = vpop.f32.mrb[23].mxu0  ;;  %3293 = vtanh.f32 %v1454_v42  ;;  %v2725_v50 = vmul.f32 -1.442695, %v1454_v42 }
 0xa91   :  { %3295 = vpow2.f32 %v2727_v49 }
 0xa92   :  { %3297 = vpow2.f32 %v2725_v50 }
 0xa98   :  { %v3292_v47 = vpop.eup %3291 }
 0xa99   :  { %1547 = vrot.lane.b32.xlu0 %v3292_v47, %s3406_s22 }
 0xa9a   :  { %v3294_v48 = vpop.eup %3293 }
 0xa9b   :  { %1468 = vrot.lane.b32.xlu1 %v3294_v48, %s3406_s22  ;;  %v3296_v17 = vpop.eup %3295 }
 0xa9c   :  { %v3298_v51 = vpop.eup %3297  ;;  %v1538_v52 = vadd.f32 1.0, %v3296_v17 }
 0xa9d   :  { %v1462_v53 = vadd.f32 1.0, %v3298_v51 }
 0xa9e   :  { %3299 = vrcp.f32 %v1538_v52 }
 0xa9f   :  { %3301 = vrcp.f32 %v1462_v53 }
 0xaa8   :  { %v3300_v54 = vpop.eup %3299 }
 0xaa9   :  { %v3302_v57 = vpop.eup %3301  ;;  %v1545_v61 = vmul.f32 %v3300_v54, %v1543_v60 }
 0xaaa   :  { %v1466_v1 = vmul.f32 %v3302_v57, %v3881_v11 }
 0xb0b   :  { %v1548_v55 = vpop.permute.xlu0 %1547 }
 0xb0c   :  { %v1550_v56 = vmul.f32 %v3300_v54, %v1548_v55 }
 0xb0d   :  { %v1469_v58 = vpop.permute.xlu1 %1468 }
 0xb0e   :  { %1552 = vrot.lane.b32.xlu0 %v1550_v56, %s3407_s7  ;;  %v1471_v59 = vmul.f32 %v3302_v57, %v1469_v58 }
 0xb10   :  { %1473 = vrot.lane.b32.xlu1 %v1471_v59, %s3407_s7 }
 0xb80   :  { %v1553_v62 = vpop.permute.xlu0 %1552 }
 0xb81   :  { %v3919_v63 = vadd.f32 %v1553_v62, %v1545_v61 }
 0xb82   :  { %v1474_v2 = vpop.permute.xlu1 %1473 }
 0xb83   :  { %3303 = vtanh.f32 %v3919_v63  ;;  %v3923_v3 = vadd.f32 %v1474_v2, %v1466_v1  ;;  %v1699_v56 = vrot.slane %v3919_v63, 6 }
 0xb85   :  { %3305 = vtanh.f32 %v3923_v3 }
 0xb8d   :  { %v3304_v4 = vpop.eup %3303 }
 0xb8e   :  { %1558 = vrot.lane.b32.xlu0 %v3304_v4, %s3406_s22 }
 0xb8f   :  { %v3306_v5 = vpop.eup %3305 }
 0xb90   :  { %1479 = vrot.lane.b32.xlu1 %v3306_v5, %s3406_s22 }
 0xc00   :  { %v1559_v6 = vpop.permute.xlu0 %1558 }
 0xc01   :  { %v1561_v7 = vmul.f32 %v3300_v54, %v1559_v6 }
 0xc02   :  { %v1480_v14 = vpop.permute.xlu1 %1479 }
 0xc03   :  { %v1642_v12 = vpack.c.bf16 %v1561_v7, %v1561_v7  ;;  %1563 = vrot.lane.b32.xlu1 %v1561_v7, %s3407_s7  ;;  %v1482_v11 = vmul.f32 %v3302_v57, %v1480_v14 }
 0xc05   :  { %v1644_v0 = vrot.slane %v1642_v12, 3  ;;  %v1567_v18 = vrot.slane %v1482_v11, 2  ;;  %v2426_v19 = vrot.slane %v1482_v11, 4 }
 0xc07   :  { %1645 = vrot.lane.b32.xlu1 %v1644_v0, %s3407_s7  ;;  %v3934_v21 = vsel %vm2437_vm6, %v2436_v20, %v2426_v19  ;;  %1568 = vrot.lane.b32.xlu0 %v1567_v18, %s3406_s22 }
 0xc75   :  { %v1564_v15 = vpop.permute.xlu1 %1563 }
 0xc79   :  { %v1646_v22 = vpop.permute.xlu1 %1645  ;;  %v1569_v24 = vpop.permute.xlu0 %1568 }
 0xc7a   :  { %3046 = vmatmul.mubr.msk.bf16.vlgmr.msra.gmra.mrb[24].mxu0 %vm915_vm5, %v1646_v22  ;;  %v1571_v27 = vsel %vm915_vm5, %v1564_v15, %v1569_v24 }
 0xc7b   :  { %3050 = vmatpush3.bf16.msra.mxu0 %v3779_v35  ;;  %3057 = vmatprep.mubr.msk.bf16.mxu0 %vm3405_vm0, %v3404_v25  ;;  %v1572_v23 = vpack.c.bf16 %v1571_v27, %v1571_v27 }
 0xc7c   :  { %3051 = vmatprep.subr.bf16.mxu0 %v3404_v25 }
 0xc7d   :  { %v1574_v28 = vrot.slane %v1572_v23, 3 }
 0xc7f   :  { %3052 = vmatpush3.bf16.msra.mxu0 %v3785_v36  ;;  %3038 = vmatmul.mubr.msk.bf16.vlgmr.msra.gmra.mrb[28].mxu1 %vm835_vm3, %v1574_v28 }
 0xc80   :  { %3053 = vmatprep.subr.bf16.mxu0 %v3404_v25  ;;  %3062 = vmatpush3.bf16.msra.mxu1 %v3739_v8 }
 0xc81   :  { %3065 = vmatprep.mubr.msk.bf16.mxu1 %vm3405_vm0, %v3404_v25  ;;  %3063 = vmatprep.subr.bf16.mxu1 %v3404_v25 }
 0xc83   :  { %3054 = vmatpush3.bf16.msra.mxu0 %v3792_v26 }
 0xc84   :  { %3055 = vmatprep.subr.bf16.mxu0 %v3404_v25  ;;  %3064 = vmatpush3.bf16.msra.mxu1 %v3747_v10 }
 0xc85   :  { %3069 = vmatprep.subr.bf16.mxu1 %v3404_v25 }
 0xc87   :  { %3056 = vmatpush3.bf16.msra.mxu0 %v3801_v38 }
 0xc88   :  { %3081 = vmatprep.subr.bf16.mxu0 %v3404_v25 }
 0xd4d   :  { %v1684_v29 = vpop.f32.mrb[24].mxu0 }
 0xd4e   :  { %v1690_v30 = vadd.f32 %v1684_v29, %v3766_v16  ;;  %v3047_v31 = vpop.f32.mrb[25].mxu0 }
 0xd4f   :  { %v1687_v32 = vpop.f32.mrb[26].mxu0 }
 0xd50   :  { %3307 = vtanh.f32 %v1690_v30  ;;  %v3048_v33 = vpop.f32.mrb[27].mxu0  ;;  %v2731_v44 = vmul.f32 -1.442695, %v1690_v30 }
 0xd52   :  { %v1612_v34 = vpop.f32.mrb[28].mxu1 }
 0xd53   :  { %v1613_v37 = vadd.f32 %v3829_v46, %v1612_v34  ;;  %v3039_v39 = vpop.f32.mrb[29].mxu1 }
 0xd54   :  { %v1615_v40 = vpop.f32.mrb[30].mxu1 }
 0xd55   :  { %3309 = vtanh.f32 %v1613_v37  ;;  %v3040_v41 = vpop.f32.mrb[31].mxu1  ;;  %v2729_v45 = vmul.f32 -1.442695, %v1613_v37 }
 0xd56   :  { %3311 = vpow2.f32 %v2731_v44 }
 0xd57   :  { %3313 = vpow2.f32 %v2729_v45 }
 0xd5a   :  { %v3308_v42 = vpop.eup %3307 }
 0xd5b   :  { %1703 = vrot.lane.b32.xlu1 %v3308_v42, %s3406_s22 }
 0xd5f   :  { %v3310_v43 = vpop.eup %3309 }
 0xd60   :  { %1627 = vrot.lane.b32.xlu0 %v3310_v43, %s3406_s22  ;;  %v3312_v47 = vpop.eup %3311 }
 0xd61   :  { %v1694_v48 = vadd.f32 1.0, %v3312_v47  ;;  %v3314_v49 = vpop.eup %3313 }
 0xd62   :  { %v1621_v50 = vadd.f32 1.0, %v3314_v49 }
 0xd63   :  { %3315 = vrcp.f32 %v1694_v48 }
 0xd64   :  { %3317 = vrcp.f32 %v1621_v50 }
 0xd6d   :  { %v3316_v17 = vpop.eup %3315 }
 0xd6e   :  { %v3318_v53 = vpop.eup %3317  ;;  %v1701_v57 = vmul.f32 %v3316_v17, %v1699_v56 }
 0xd6f   :  { %v1625_v60 = vmul.f32 %v3318_v53, %v3923_v3 }
 0xdcd   :  { %v1704_v51 = vpop.permute.xlu1 %1703 }
 0xdce   :  { %v1706_v52 = vmul.f32 %v3316_v17, %v1704_v51 }
 0xdd0   :  { %1708 = vrot.lane.b32.xlu1 %v1706_v52, %s3407_s7 }
 0xdd2   :  { %v1628_v54 = vpop.permute.xlu0 %1627 }
 0xdd3   :  { %v1630_v55 = vmul.f32 %v3318_v53, %v1628_v54 }
 0xdd5   :  { %1632 = vrot.lane.b32.xlu0 %v1630_v55, %s3407_s7 }
 0xe42   :  { %v1709_v58 = vpop.permute.xlu1 %1708 }
 0xe43   :  { %v3963_v59 = vadd.f32 %v1709_v58, %v1701_v57 }
 0xe45   :  { %3319 = vtanh.f32 %v3963_v59  ;;  %v1854_v49 = vrot.slane %v3963_v59, 6 }
 0xe47   :  { %v1633_v61 = vpop.permute.xlu0 %1632 }
 0xe48   :  { %v3967_v62 = vadd.f32 %v1633_v61, %v1625_v60 }
 0xe4a   :  { %3321 = vtanh.f32 %v3967_v62 }
 0xe4f   :  { %v3320_v1 = vpop.eup %3319 }
 0xe50   :  { %1714 = vrot.lane.b32.xlu1 %v3320_v1, %s3406_s22 }
 0xe54   :  { %v3322_v2 = vpop.eup %3321 }
 0xe55   :  { %1638 = vrot.lane.b32.xlu0 %v3322_v2, %s3406_s22 }
 0xec2   :  { %v1715_v63 = vpop.permute.xlu1 %1714 }
 0xec3   :  { %v1717_v4 = vmul.f32 %v3316_v17, %v1715_v63 }
 0xec5   :  { %1719 = vrot.lane.b32.xlu0 %v1717_v4, %s3407_s7  ;;  %v1795_v5 = vpack.c.bf16 %v1717_v4, %v1717_v4 }
 0xec7   :  { %v1639_v6 = vpop.permute.xlu0 %1638 }
 0xec8   :  { %v1641_v7 = vmul.f32 %v3318_v53, %v1639_v6 }
 0xec9   :  { %1797 = vrot.lane.b32.xlu0 %v1795_v5, %s3407_s7 }
 0xeca   :  { %v2428_v3 = vrot.slane %v1641_v7, 2  ;;  %1723 = vrot.lane.b32.xlu1 %v1641_v7, %s3406_s22 }
 0xecc   :  { %v3977_v9 = vsel %vm2439_vm7, %v3934_v21, %v2428_v3 }
 0xf37   :  { %v1720_v12 = vpop.permute.xlu0 %1719 }
 0xf3b   :  { %v1798_v14 = vpop.permute.xlu0 %1797 }
 0xf3c   :  { %3066 = vmatmul.mubr.msk.bf16.vlgmr.msra.gmra.mrb[32].mxu1 %vm915_vm5, %v1798_v14  ;;  %v1724_v11 = vpop.permute.xlu1 %1723 }
 0xf3d   :  { %3070 = vmatpush3.bf16.msra.mxu1 %v3779_v35  ;;  %3077 = vmatprep.mubr.msk.bf16.mxu1 %vm3405_vm0, %v3404_v25  ;;  %v1726_v0 = vsel %vm915_vm5, %v1720_v12, %v1724_v11 }
 0xf3e   :  { %3071 = vmatprep.subr.bf16.mxu1 %v3404_v25  ;;  %v1727_v18 = vpack.c.bf16 %v1726_v0, %v1726_v0 }
 0xf40   :  { %3058 = vmatmul.mubr.msk.bf16.vlgmr.msra.gmra.mrb[28].mxu0 %vm835_vm3, %v1727_v18 }
 0xf41   :  { %3072 = vmatpush3.bf16.msra.mxu1 %v3785_v36  ;;  %3082 = vmatpush3.bf16.msra.mxu0 %v3739_v8 }
 0xf42   :  { %3073 = vmatprep.subr.bf16.mxu1 %v3404_v25  ;;  %3083 = vmatprep.subr.bf16.mxu0 %v3404_v25 }
 0xf43   :  { %3085 = vmatprep.mubr.msk.bf16.mxu0 %vm3405_vm0, %v3404_v25 }
 0xf45   :  { %3074 = vmatpush3.bf16.msra.mxu1 %v3792_v26  ;;  %3084 = vmatpush3.bf16.msra.mxu0 %v3747_v10 }
 0xf46   :  { %3075 = vmatprep.subr.bf16.mxu1 %v3404_v25  ;;  %3089 = vmatprep.subr.bf16.mxu0 %v3404_v25 }
 0xf49   :  { %3076 = vmatpush3.bf16.msra.mxu1 %v3801_v38 }
 0xf4a   :  { %3101 = vmatprep.subr.bf16.mxu1 %v3404_v25 }
0x100f   :  { %v1836_v19 = vpop.f32.mrb[32].mxu1 }
0x1010   :  { %v1843_v20 = vrot.slane %v1836_v19, 6  ;;  %v3067_v21 = vpop.f32.mrb[33].mxu1 }
0x1011   :  { %v1839_v15 = vpop.f32.mrb[34].mxu1 }
0x1012   :  { %v1845_v22 = vadd.f32 %v1843_v20, %v3766_v16  ;;  %v3068_v24 = vpop.f32.mrb[35].mxu1 }
0x1013   :  { %v1765_v27 = vpop.f32.mrb[28].mxu0 }
0x1014   :  { %3323 = vtanh.f32 %v1845_v22  ;;  %v1766_v23 = vadd.f32 %v3829_v46, %v1765_v27  ;;  %v3059_v28 = vpop.f32.mrb[29].mxu0  ;;  %v2735_v33 = vmul.f32 -1.442695, %v1845_v22 }
0x1015   :  { %v1768_v29 = vpop.f32.mrb[30].mxu0 }
0x1016   :  { %3325 = vtanh.f32 %v1766_v23  ;;  %v3060_v30 = vpop.f32.mrb[31].mxu0  ;;  %v2733_v34 = vmul.f32 -1.442695, %v1766_v23 }
0x1017   :  { %3327 = vpow2.f32 %v2735_v33 }
0x1018   :  { %3329 = vpow2.f32 %v2733_v34 }
0x101e   :  { %v3324_v31 = vpop.eup %3323 }
0x101f   :  { %1858 = vrot.lane.b32.xlu0 %v3324_v31, %s3406_s22 }
0x1020   :  { %v3326_v32 = vpop.eup %3325 }
0x1021   :  { %1780 = vrot.lane.b32.xlu1 %v3326_v32, %s3406_s22  ;;  %v3328_v37 = vpop.eup %3327 }
0x1022   :  { %v3330_v39 = vpop.eup %3329  ;;  %v1849_v40 = vadd.f32 1.0, %v3328_v37 }
0x1023   :  { %v1774_v41 = vadd.f32 1.0, %v3330_v39 }
0x1024   :  { %3331 = vrcp.f32 %v1849_v40 }
0x1025   :  { %3333 = vrcp.f32 %v1774_v41 }
0x102e   :  { %v3332_v42 = vpop.eup %3331 }
0x102f   :  { %v3334_v45 = vpop.eup %3333  ;;  %v1856_v50 = vmul.f32 %v3332_v42, %v1854_v49 }
0x1030   :  { %v1778_v52 = vmul.f32 %v3334_v45, %v3967_v62 }
0x1091   :  { %v1859_v43 = vpop.permute.xlu0 %1858 }
0x1092   :  { %v1861_v44 = vmul.f32 %v3332_v42, %v1859_v43 }
0x1093   :  { %v1781_v47 = vpop.permute.xlu1 %1780 }
0x1094   :  { %1863 = vrot.lane.b32.xlu0 %v1861_v44, %s3407_s7  ;;  %v1783_v48 = vmul.f32 %v3334_v45, %v1781_v47 }
0x1096   :  { %1785 = vrot.lane.b32.xlu1 %v1783_v48, %s3407_s7 }
0x1106   :  { %v1864_v17 = vpop.permute.xlu0 %1863 }
0x1107   :  { %v4005_v51 = vadd.f32 %v1864_v17, %v1856_v50 }
0x1108   :  { %v1786_v53 = vpop.permute.xlu1 %1785 }
0x1109   :  { %3335 = vtanh.f32 %v4005_v51  ;;  %v4009_v54 = vadd.f32 %v1786_v53, %v1778_v52  ;;  %v2013_v34 = vrot.slane %v4005_v51, 6 }
0x110b   :  { %3337 = vtanh.f32 %v4009_v54 }
0x1113   :  { %v3336_v55 = vpop.eup %3335 }
0x1114   :  { %1869 = vrot.lane.b32.xlu0 %v3336_v55, %s3406_s22 }
0x1115   :  { %v3338_v56 = vpop.eup %3337 }
0x1116   :  { %1791 = vrot.lane.b32.xlu1 %v3338_v56, %s3406_s22  ;;  %v4065_v56 = vld [vmem:[%s4206_s8] sm:$0xff]  }
0x1186   :  { %v1870_v57 = vpop.permute.xlu0 %1869 }
0x1187   :  { %v1872_v58 = vmul.f32 %v3332_v42, %v1870_v57 }
0x1188   :  { %v1792_v60 = vpop.permute.xlu1 %1791 }
0x1189   :  { %v1953_v59 = vpack.c.bf16 %v1872_v58, %v1872_v58  ;;  %1874 = vrot.lane.b32.xlu1 %v1872_v58, %s3407_s7  ;;  %v4015_v61 = vmul.f32 %v3334_v45, %v1792_v60  ;;  %v4075_v60 = vld [vmem:[%s4206_s8 + $0x8] sm:$0xff]  }
0x118b   :  { %v1955_v62 = vrot.slane %v1953_v59, 1  ;;  %v1878_v1 = vrot.slane %v4015_v61, 6 }
0x118d   :  { %1956 = vrot.lane.b32.xlu1 %v1955_v62, %s3407_s7  ;;  %1879 = vrot.lane.b32.xlu0 %v1878_v1, %s3406_s22  ;;  %v3397_v62 = vld [vmem:[%s4203_s6] sm:$0xff]   ;;  %v4089_v1 = vld [vmem:[%s4206_s8 + $0x10] sm:$0xff]  }
0x11fb   :  { %v1875_v2 = vpop.permute.xlu1 %1874 }
0x11ff   :  { %v1957_v63 = vpop.permute.xlu1 %1956  ;;  %v1880_v4 = vpop.permute.xlu0 %1879 }
0x1200   :  { %3086 = vmatmul.mubr.msk.bf16.vlgmr.msra.gmra.mrb[32].mxu0 %vm915_vm5, %v1957_v63  ;;  %v1882_v5 = vsel %vm915_vm5, %v1875_v2, %v1880_v4  ;;  %v3399_v2 = vld [vmem:[%s4203_s6 + $0x8] sm:$0xff]  }
0x1201   :  { %3090 = vmatpush3.bf16.msra.mxu0 %v3779_v35  ;;  %3097 = vmatprep.mubr.msk.bf16.mxu0 %vm3405_vm0, %v3404_v25  ;;  %v1883_v6 = vpack.c.bf16 %v1882_v5, %v1882_v5 }
0x1202   :  { %3091 = vmatprep.subr.bf16.mxu0 %v3404_v25 }
0x1203   :  { %v1885_v7 = vrot.slane %v1883_v6, 1 }
0x1205   :  { %3092 = vmatpush3.bf16.msra.mxu0 %v3785_v36  ;;  %3078 = vmatmul.mubr.msk.bf16.vlgmr.msra.gmra.mrb[36].mxu1 %vm835_vm3, %v1885_v7 }
0x1206   :  { %3093 = vmatprep.subr.bf16.mxu0 %v3404_v25  ;;  %3102 = vmatpush3.bf16.msra.mxu1 %v3739_v8 }
0x1207   :  { %3105 = vmatprep.mubr.msk.bf16.mxu1 %vm3405_vm0, %v3404_v25  ;;  %3103 = vmatprep.subr.bf16.mxu1 %v3404_v25 }
0x1209   :  { %3094 = vmatpush3.bf16.msra.mxu0 %v3792_v26 }
0x120a   :  { %3095 = vmatprep.subr.bf16.mxu0 %v3404_v25  ;;  %3104 = vmatpush3.bf16.msra.mxu1 %v3747_v10 }
0x120b   :  { %3109 = vmatprep.subr.bf16.mxu1 %v3404_v25 }
0x120d   :  { %3096 = vmatpush3.bf16.msra.mxu0 %v3801_v38 }
0x120e   :  { %3121 = vmatprep.subr.bf16.mxu0 %v3404_v25 }
0x12d3   :  { %v1995_v35 = vpop.f32.mrb[32].mxu0 }
0x12d4   :  { %v2002_v36 = vrot.slane %v1995_v35, 4  ;;  %v3087_v8 = vpop.f32.mrb[33].mxu0 }
0x12d5   :  { %v1998_v3 = vpop.f32.mrb[34].mxu0 }
0x12d6   :  { %v2004_v12 = vadd.f32 %v2002_v36, %v3766_v16  ;;  %v3088_v14 = vpop.f32.mrb[35].mxu0 }
0x12d8   :  { %3339 = vtanh.f32 %v2004_v12  ;;  %v1923_v11 = vpop.f32.mrb[36].mxu1  ;;  %v2739_v21 = vmul.f32 -1.442695, %v2004_v12 }
0x12d9   :  { %v1924_v26 = vadd.f32 %v3829_v46, %v1923_v11  ;;  %v3079_v0 = vpop.f32.mrb[37].mxu1 }
0x12da   :  { %v1926_v18 = vpop.f32.mrb[38].mxu1 }
0x12db   :  { %3341 = vtanh.f32 %v1924_v26  ;;  %v3080_v10 = vpop.f32.mrb[39].mxu1  ;;  %v2737_v15 = vmul.f32 -1.442695, %v1924_v26 }
0x12dc   :  { %3343 = vpow2.f32 %v2739_v21 }
0x12dd   :  { %3345 = vpow2.f32 %v2737_v15 }
0x12e2   :  { %v3340_v19 = vpop.eup %3339 }
0x12e3   :  { %2017 = vrot.lane.b32.xlu1 %v3340_v19, %s3406_s22 }
0x12e5   :  { %v3342_v20 = vpop.eup %3341 }
0x12e6   :  { %1938 = vrot.lane.b32.xlu0 %v3342_v20, %s3406_s22  ;;  %v3344_v22 = vpop.eup %3343 }
0x12e7   :  { %v2008_v24 = vadd.f32 1.0, %v3344_v22  ;;  %v3346_v27 = vpop.eup %3345 }
0x12e8   :  { %v1932_v23 = vadd.f32 1.0, %v3346_v27 }
0x12e9   :  { %3347 = vrcp.f32 %v2008_v24 }
0x12ea   :  { %3349 = vrcp.f32 %v1932_v23 }
0x12f3   :  { %v3348_v28 = vpop.eup %3347 }
0x12f4   :  { %v3350_v31 = vpop.eup %3349  ;;  %v2015_v37 = vmul.f32 %v3348_v28, %v2013_v34 }
0x12f5   :  { %v1936_v41 = vmul.f32 %v3350_v31, %v4009_v54 }
0x1355   :  { %v2018_v29 = vpop.permute.xlu1 %2017 }
0x1356   :  { %v2020_v30 = vmul.f32 %v3348_v28, %v2018_v29 }
0x1358   :  { %2022 = vrot.lane.b32.xlu1 %v2020_v30, %s3407_s7  ;;  %v1939_v32 = vpop.permute.xlu0 %1938 }
0x1359   :  { %v1941_v33 = vmul.f32 %v3350_v31, %v1939_v32 }
0x135b   :  { %1943 = vrot.lane.b32.xlu0 %v1941_v33, %s3407_s7 }
0x13ca   :  { %v2023_v39 = vpop.permute.xlu1 %2022 }
0x13cb   :  { %v4046_v40 = vadd.f32 %v2023_v39, %v2015_v37 }
0x13cd   :  { %3351 = vtanh.f32 %v4046_v40  ;;  %v1944_v42 = vpop.permute.xlu0 %1943  ;;  %v2172_v27 = vrot.slane %v4046_v40, 6 }
0x13ce   :  { %v4050_v43 = vadd.f32 %v1944_v42, %v1936_v41 }
0x13d0   :  { %3353 = vtanh.f32 %v4050_v43 }
0x13d7   :  { %v3352_v44 = vpop.eup %3351 }
0x13d8   :  { %2028 = vrot.lane.b32.xlu1 %v3352_v44, %s3406_s22 }
0x13da   :  { %v3354_v45 = vpop.eup %3353 }
0x13db   :  { %1949 = vrot.lane.b32.xlu0 %v3354_v45, %s3406_s22 }
0x144a   :  { %v2029_v47 = vpop.permute.xlu1 %2028 }
0x144b   :  { %v2031_v48 = vmul.f32 %v3348_v28, %v2029_v47 }
0x144d   :  { %v2112_v49 = vpack.c.bf16 %v2031_v48, %v2031_v48  ;;  %2033 = vrot.lane.b32.xlu0 %v2031_v48, %s3407_s7  ;;  %v1950_v50 = vpop.permute.xlu0 %1949 }
0x144e   :  { %v4056_v51 = vmul.f32 %v3350_v31, %v1950_v50 }
0x144f   :  { %v2114_v17 = vrot.slane %v2112_v49, 2 }
0x1450   :  { %v2037_v52 = vrot.slane %v4056_v51, 4  ;;  %v2430_v41 = vrot.slane %v4056_v51, 6 }
0x1451   :  { %2115 = vrot.lane.b32.xlu0 %v2114_v17, %s3407_s7 }
0x1452   :  { %2038 = vrot.lane.b32.xlu1 %v2037_v52, %s3406_s22  ;;  %v2441_v48 = vsel %vm882_vm4, %v4015_v61, %v2430_v41 }
0x14bf   :  { %v2034_v53 = vpop.permute.xlu0 %2033 }
0x14c3   :  { %v2116_v54 = vpop.permute.xlu0 %2115 }
0x14c4   :  { %3106 = vmatmul.mubr.msk.bf16.vlgmr.msra.gmra.mrb[40].mxu1 %vm915_vm5, %v2116_v54  ;;  %v2039_v55 = vpop.permute.xlu1 %2038  ;;  %v3400_v54 = vld [vmem:[%s4206_s8 + $0x18] sm:$0xff]  }
0x14c5   :  { %3110 = vmatpush3.bf16.msra.mxu1 %v4065_v56  ;;  %3117 = vmatprep.mubr.msk.bf16.mxu1 %vm3405_vm0, %v3404_v25  ;;  %v2041_v57 = vsel %vm915_vm5, %v2034_v53, %v2039_v55 }
0x14c6   :  { %3111 = vmatprep.subr.bf16.mxu1 %v3404_v25  ;;  %v2042_v58 = vpack.c.bf16 %v2041_v57, %v2041_v57 }
0x14c8   :  { %v2044_v59 = vrot.slane %v2042_v58, 2 }
0x14c9   :  { %3112 = vmatpush3.bf16.msra.mxu1 %v4075_v60 }
0x14ca   :  { %3113 = vmatprep.subr.bf16.mxu1 %v3404_v25  ;;  %3098 = vmatmul.mubr.msk.bf16.vlgmr.msra.gmra.mrb[36].mxu0 %vm835_vm3, %v2044_v59 }
0x14cb   :  { %3122 = vmatpush3.bf16.msra.mxu0 %v3397_v62  ;;  %3125 = vmatprep.mubr.msk.bf16.mxu0 %vm3405_vm0, %v3404_v25  ;;  %v3401_v62 = vld [vmem:[%s4207_s9] ss:$0 sm:$0xff] }
0x14cc   :  { %3123 = vmatprep.subr.bf16.mxu0 %v3404_v25 }
0x14cd   :  { %3114 = vmatpush3.bf16.msra.mxu1 %v4089_v1 }
0x14ce   :  { %3115 = vmatprep.subr.bf16.mxu1 %v3404_v25 }
0x14cf   :  { %3124 = vmatpush3.bf16.msra.mxu0 %v3399_v2 }
0x14d0   :  { %3129 = vmatprep.subr.bf16.mxu0 %v3404_v25 }
0x14d1   :  { %3116 = vmatpush3.bf16.msra.mxu1 %v3801_v38 }
0x1597   :  { %v2154_v63 = vpop.f32.mrb[40].mxu1 }
0x1598   :  { %v2161_v4 = vrot.slane %v2154_v63, 2  ;;  %v3107_v5 = vpop.f32.mrb[41].mxu1 }
0x1599   :  { %v2157_v6 = vpop.f32.mrb[42].mxu1 }
0x159a   :  { %v2163_v7 = vadd.f32 %v2161_v4, %v3766_v16  ;;  %v3108_v35 = vpop.f32.mrb[43].mxu1 }
0x159c   :  { %3355 = vtanh.f32 %v2163_v7  ;;  %v2743_v26 = vmul.f32 -1.442695, %v2163_v7 }
0x159d   :  { %v2082_v36 = vpop.f32.mrb[36].mxu0 }
0x159e   :  { %v2083_v8 = vadd.f32 %v3829_v46, %v2082_v36  ;;  %v3099_v3 = vpop.f32.mrb[37].mxu0 }
0x159f   :  { %v2085_v12 = vpop.f32.mrb[38].mxu0 }
0x15a0   :  { %3357 = vtanh.f32 %v2083_v8  ;;  %v3100_v14 = vpop.f32.mrb[39].mxu0  ;;  %v2741_v0 = vmul.f32 -1.442695, %v2083_v8 }
0x15a1   :  { %3359 = vpow2.f32 %v2743_v26 }
0x15a2   :  { %3361 = vpow2.f32 %v2741_v0 }
0x15a6   :  { %v3356_v11 = vpop.eup %3355 }
0x15a7   :  { %2176 = vrot.lane.b32.xlu0 %v3356_v11, %s3406_s22 }
0x15aa   :  { %v3358_v38 = vpop.eup %3357 }
0x15ab   :  { %2097 = vrot.lane.b32.xlu1 %v3358_v38, %s3406_s22  ;;  %v3360_v16 = vpop.eup %3359 }
0x15ac   :  { %v2167_v18 = vadd.f32 1.0, %v3360_v16  ;;  %v3362_v10 = vpop.eup %3361 }
0x15ad   :  { %v2091_v19 = vadd.f32 1.0, %v3362_v10 }
0x15ae   :  { %3363 = vrcp.f32 %v2167_v18 }
0x15af   :  { %3365 = vrcp.f32 %v2091_v19 }
0x15b8   :  { %v3364_v46 = vpop.eup %3363 }
0x15b9   :  { %v3366_v15 = vpop.eup %3365  ;;  %v2174_v23 = vmul.f32 %v3364_v46, %v2172_v27 }
0x15ba   :  { %v2095_v30 = vmul.f32 %v3366_v15, %v4050_v43 }
0x1619   :  { %v2177_v20 = vpop.permute.xlu0 %2176 }
0x161a   :  { %v2179_v21 = vmul.f32 %v3364_v46, %v2177_v20 }
0x161c   :  { %2181 = vrot.lane.b32.xlu0 %v2179_v21, %s3407_s7 }
0x161d   :  { %v2098_v22 = vpop.permute.xlu1 %2097 }
0x161e   :  { %v2100_v24 = vmul.f32 %v3366_v15, %v2098_v22 }
0x1620   :  { %2102 = vrot.lane.b32.xlu1 %v2100_v24, %s3407_s7 }
0x168e   :  { %v2182_v28 = vpop.permute.xlu0 %2181 }
0x168f   :  { %v4105_v29 = vadd.f32 %v2182_v28, %v2174_v23 }
0x1691   :  { %3367 = vtanh.f32 %v4105_v29  ;;  %v2328_v0 = vrot.slane %v4105_v29, 6 }
0x1692   :  { %v2103_v31 = vpop.permute.xlu1 %2102 }
0x1693   :  { %v4109_v32 = vadd.f32 %v2103_v31, %v2095_v30 }
0x1695   :  { %3369 = vtanh.f32 %v4109_v32 }
0x169b   :  { %v3368_v33 = vpop.eup %3367 }
0x169c   :  { %2187 = vrot.lane.b32.xlu0 %v3368_v33, %s3406_s22 }
0x169f   :  { %v3370_v34 = vpop.eup %3369 }
0x16a0   :  { %2108 = vrot.lane.b32.xlu1 %v3370_v34, %s3406_s22 }
0x170e   :  { %v2188_v37 = vpop.permute.xlu0 %2187 }
0x170f   :  { %v2190_v39 = vmul.f32 %v3364_v46, %v2188_v37 }
0x1711   :  { %v2271_v40 = vpack.c.bf16 %v2190_v39, %v2190_v39  ;;  %2192 = vrot.lane.b32.xlu1 %v2190_v39, %s3407_s7 }
0x1712   :  { %v2109_v43 = vpop.permute.xlu1 %2108 }
0x1713   :  { %v2273_v42 = vrot.slane %v2271_v40, 3  ;;  %v2111_v44 = vmul.f32 %v3366_v15, %v2109_v43 }
0x1715   :  { %2274 = vrot.lane.b32.xlu1 %v2273_v42, %s3407_s7  ;;  %v2196_v45 = vrot.slane %v2111_v44, 2  ;;  %v2432_v47 = vrot.slane %v2111_v44, 4 }
0x1717   :  { %v4120_v49 = vsel %vm2437_vm6, %v2441_v48, %v2432_v47  ;;  %2197 = vrot.lane.b32.xlu0 %v2196_v45, %s3406_s22 }
0x1783   :  { %v2193_v50 = vpop.permute.xlu1 %2192 }
0x1787   :  { %v2275_v17 = vpop.permute.xlu1 %2274 }
0x1788   :  { %3126 = vmatmul.mubr.msk.bf16.vlgmr.msra.gmra.mrb[40].mxu0 %vm915_vm5, %v2275_v17 }
0x1789   :  { %3130 = vmatpush3.bf16.msra.mxu0 %v4065_v56  ;;  %3137 = vmatprep.mubr.msk.bf16.mxu0 %vm3405_vm0, %v3404_v25  ;;  %v2198_v51 = vpop.permute.xlu0 %2197 }
0x178a   :  { %3131 = vmatprep.subr.bf16.mxu0 %v3404_v25  ;;  %v2200_v52 = vsel %vm915_vm5, %v2193_v50, %v2198_v51 }
0x178b   :  { %v2201_v61 = vpack.c.bf16 %v2200_v52, %v2200_v52 }
0x178d   :  { %3132 = vmatpush3.bf16.msra.mxu0 %v4075_v60  ;;  %v2203_v53 = vrot.slane %v2201_v61, 3  ;;  %v3245_v61 = vld [vmem:[%s4208_s10] sm:$0xff]  }
0x178e   :  { %3133 = vmatprep.subr.bf16.mxu0 %v3404_v25  ;;  %3141 = vmatprep.subr.bf16.mxu1 %v3245_v61 }
0x178f   :  { %3118 = vmatmul.mubr.msk.bf16.vlgmr.msra.gmra.mrb[44].mxu1 %vm835_vm3, %v2203_v53  ;;  %v3246_v53 = vld [vmem:[%s4208_s10 + $0x8] sm:$0xff]  }
0x1790   :  { %3142 = vmatpush3.bf16.msra.mxu1 %v3245_v61 }
0x1791   :  { %3134 = vmatpush3.bf16.msra.mxu0 %v4089_v1  ;;  %3143 = vmatprep.subr.bf16.mxu1 %v3246_v53 }
0x1792   :  { %3135 = vmatprep.subr.bf16.mxu0 %v3404_v25 }
0x1794   :  { %3144 = vmatpush3.bf16.msra.mxu1 %v3246_v53 }
0x1795   :  { %3136 = vmatpush3.bf16.msra.mxu0 %v3400_v54 }
0x185b   :  { %v2313_v55 = vpop.f32.mrb[40].mxu0 }
0x185c   :  { %v2319_v56 = vadd.f32 %v2313_v55, %v3764_v13  ;;  %v3127_v57 = vpop.f32.mrb[41].mxu0  ;;  %v3247_v55 = vld [vmem:[%s4209_s12] sm:$0xff]  }
0x185d   :  { %v2316_v58 = vpop.f32.mrb[42].mxu0  ;;  %3149 = vmatprep.subr.bf16.mxu1 %v3247_v55 }
0x185e   :  { %3371 = vtanh.f32 %v2319_v56  ;;  %v3128_v59 = vpop.f32.mrb[43].mxu0  ;;  %v2747_v13 = vmul.f32 -1.442695, %v2319_v56 }
0x185f   :  { %v3248_v59 = vld [vmem:[%s4209_s12 + $0x8] sm:$0xff]  }
0x1862   :  { %v2241_v60 = vpop.f32.mrb[44].mxu1 }
0x1863   :  { %v2242_v1 = vadd.f32 %v3401_v62, %v2241_v60  ;;  %v3119_v2 = vpop.f32.mrb[45].mxu1 }
0x1864   :  { %v2244_v25 = vpop.f32.mrb[46].mxu1 }
0x1865   :  { %3373 = vtanh.f32 %v2242_v1  ;;  %v3120_v63 = vpop.f32.mrb[47].mxu1  ;;  %v2745_v6 = vmul.f32 -1.442695, %v2242_v1  ;;  %v3250_v1 = vld [vmem:[%s4209_s12 + $0x18] sm:$0xff]   ;;  %v2750_v25 = vld [vmem:[%s4210_s11] ss:$0 sm:$0xff] }
0x1866   :  { %3375 = vpow2.f32 %v2747_v13 }
0x1867   :  { %3377 = vpow2.f32 %v2745_v6 }
0x1868   :  { %v3372_v4 = vpop.eup %3371 }
0x1869   :  { %2332 = vrot.lane.b32.xlu1 %v3372_v4, %s3406_s22 }
0x186f   :  { %v3374_v5 = vpop.eup %3373 }
0x1870   :  { %2256 = vrot.lane.b32.xlu0 %v3374_v5, %s3406_s22  ;;  %v3376_v7 = vpop.eup %3375 }
0x1871   :  { %v2323_v35 = vadd.f32 1.0, %v3376_v7  ;;  %v3378_v36 = vpop.eup %3377 }
0x1872   :  { %v2250_v8 = vadd.f32 1.0, %v3378_v36 }
0x1873   :  { %3379 = vrcp.f32 %v2323_v35 }
0x1874   :  { %3381 = vrcp.f32 %v2250_v8  ;;  %v2755_v8 = vld [vmem:[%s4211_s13] ss:$0 sm:$0xff] }
0x187d   :  { %v3380_v3 = vpop.eup %3379 }
0x187e   :  { %v3382_v11 = vpop.eup %3381  ;;  %v2330_v16 = vmul.f32 %v3380_v3, %v2328_v0 }
0x187f   :  { %v2254_v19 = vmul.f32 %v3382_v11, %v4109_v32 }
0x18db   :  { %v2333_v12 = vpop.permute.xlu1 %2332 }
0x18dc   :  { %v2335_v14 = vmul.f32 %v3380_v3, %v2333_v12 }
0x18de   :  { %2337 = vrot.lane.b32.xlu1 %v2335_v14, %s3407_s7 }
0x18e2   :  { %v2257_v38 = vpop.permute.xlu0 %2256 }
0x18e3   :  { %v2259_v26 = vmul.f32 %v3382_v11, %v2257_v38 }
0x18e5   :  { %2261 = vrot.lane.b32.xlu0 %v2259_v26, %s3407_s7 }
0x1950   :  { %v2338_v18 = vpop.permute.xlu1 %2337 }
0x1951   :  { %v2340_v10 = vadd.f32 %v2338_v18, %v2330_v16 }
0x1953   :  { %3383 = vtanh.f32 %v2340_v10 }
0x1957   :  { %v2262_v46 = vpop.permute.xlu0 %2261 }
0x1958   :  { %v2264_v20 = vadd.f32 %v2262_v46, %v2254_v19 }
0x195a   :  { %3385 = vtanh.f32 %v2264_v20 }
0x195d   :  { %v3384_v21 = vpop.eup %3383 }
0x195e   :  { %2343 = vrot.lane.b32.xlu1 %v3384_v21, %s3406_s22 }
0x1964   :  { %v3386_v15 = vpop.eup %3385 }
0x1965   :  { %2267 = vrot.lane.b32.xlu0 %v3386_v15, %s3406_s22 }
0x19d0   :  { %v2344_v22 = vpop.permute.xlu1 %2343 }
0x19d1   :  { %v2346_v24 = vmul.f32 %v3380_v3, %v2344_v22 }
0x19d3   :  { %2348 = vrot.lane.b32.xlu0 %v2346_v24, %s3407_s7 }
0x19d7   :  { %v2268_v27 = vpop.permute.xlu0 %2267 }
0x19d8   :  { %v2270_v23 = vmul.f32 %v3382_v11, %v2268_v27 }
0x19da   :  { %v2434_v28 = vrot.slane %v2270_v23, 2  ;;  %2352 = vrot.lane.b32.xlu1 %v2270_v23, %s3406_s22 }
0x19dc   :  { %v2443_v29 = vsel %vm2439_vm7, %v4120_v49, %v2434_v28 }
0x19dd   :  { %v2444_v30 = vpack.c.bf16 %v2443_v29, %v3977_v9 }
0x1a45   :  { %v2349_v31 = vpop.permute.xlu0 %2348 }
0x1a4c   :  { %v2353_v32 = vpop.permute.xlu1 %2352 }
0x1a4d   :  { %v2355_v33 = vsel %vm915_vm5, %v2349_v31, %v2353_v32 }
0x1a4e   :  { %v2356_v34 = vpack.c.bf16 %v2355_v33, %v2355_v33 }
0x1a50   :  { %3138 = vmatmul.mubr.msk.bf16.vlgmr.msra.gmra.mrb[44].mxu0 %vm835_vm3, %v2356_v34 }
0x1b23   :  { %v2394_v37 = vpop.f32.mrb[44].mxu0 }
0x1b24   :  { %v2395_v39 = vadd.f32 %v3401_v62, %v2394_v37  ;;  %v3139_v40 = vpop.f32.mrb[45].mxu0  ;;  %v3249_v62 = vld [vmem:[%s4209_s12 + $0x10] sm:$0xff]  }
0x1b25   :  { %v2397_v41 = vpop.f32.mrb[46].mxu0 }
0x1b26   :  { %3387 = vtanh.f32 %v2395_v39  ;;  %v3140_v42 = vpop.f32.mrb[47].mxu0  ;;  %v2749_v44 = vmul.f32 -1.442695, %v2395_v39 }
0x1b28   :  { %3389 = vpow2.f32 %v2749_v44 }
0x1b30   :  { %v3388_v43 = vpop.eup %3387 }
0x1b31   :  { %2409 = vrot.lane.b32.xlu0 %v3388_v43, %s3406_s22 }
0x1b32   :  { %v3390_v45 = vpop.eup %3389 }
0x1b33   :  { %v2403_v9 = vadd.f32 1.0, %v3390_v45 }
0x1b35   :  { %3391 = vrcp.f32 %v2403_v9 }
0x1b3f   :  { %v3392_v47 = vpop.eup %3391 }
0x1b40   :  { %v2407_v50 = vmul.f32 %v3392_v47, %v2264_v20 }
0x1ba3   :  { %v2410_v48 = vpop.permute.xlu0 %2409 }
0x1ba4   :  { %v2412_v49 = vmul.f32 %v3392_v47, %v2410_v48 }
0x1ba6   :  { %2414 = vrot.lane.b32.xlu1 %v2412_v49, %s3407_s7 }
0x1baa   :  { %2459 = vrot.lane.b32.xlu1 %v2444_v30, %s3407_s7 }
0x1c18   :  { %v2415_v17 = vpop.permute.xlu1 %2414 }
0x1c19   :  { %v2417_v51 = vadd.f32 %v2415_v17, %v2407_v50 }
0x1c1b   :  { %3393 = vtanh.f32 %v2417_v51 }
0x1c1c   :  { %v2460_v52 = vpop.permute.xlu1 %2459 }
0x1c1d   :  { %3145 = vmatprep.mubr.msk.bf16.mxu1 %vm915_vm5, %v2460_v52 }
0x1c25   :  { %v3394_v54 = vpop.eup %3393 }
0x1c26   :  { %2420 = vrot.lane.b32.xlu0 %v3394_v54, %s3406_s22 }
0x1c98   :  { %v2421_v56 = vpop.permute.xlu0 %2420 }
0x1c99   :  { %v2423_v57 = vmul.f32 %v3392_v47, %v2421_v56 }
0x1c9b   :  { %v2445_v58 = vpack.c.bf16 %v2423_v57, %v2423_v57 }
0x1c9d   :  { %2461 = vrot.lane.b32.xlu0 %v2445_v58, %s3407_s7 }
0x1d0f   :  { %v2462_v60 = vpop.permute.xlu0 %2461 }
0x1d10   :  { %3146 = vmatmul.mubr.msk.bf16.vlgmr.msra.gmra.mrb[48].mxu1 %vm915_vm5, %v2462_v60 }
0x1d11   :  { %3150 = vmatpush3.bf16.msra.mxu1 %v3247_v55 }
0x1d12   :  { %3151 = vmatprep.subr.bf16.mxu1 %v3248_v59 }
0x1d15   :  { %3152 = vmatpush3.bf16.msra.mxu1 %v3248_v59 }
0x1d16   :  { %3153 = vmatprep.subr.bf16.mxu1 %v3249_v62 }
0x1d19   :  { %3154 = vmatpush3.bf16.msra.mxu1 %v3249_v62 }
0x1d1a   :  { %3155 = vmatprep.subr.bf16.mxu1 %v3250_v1 }
0x1d1d   :  { %3156 = vmatpush3.bf16.msra.mxu1 %v3250_v1 }
0x1de3   :  { %v3147_v2 = vpop.f32.mrb[48].mxu1 }
0x1de4   :  { %v2515_v63 = vpop.f32.mrb[49].mxu1  ;;  %v2524_v5 = vadd.f32 %v3147_v2, %v2750_v25 }
0x1de5   :  { %v3148_v4 = vpop.f32.mrb[50].mxu1  ;;  %v2516_v6 = vadd.f32 %v2750_v25, %v2515_v63 }
0x1de6   :  { %v2518_v13 = vpop.f32.mrb[51].mxu1  ;;  %v2530_v36 = vpack.c.bf16 %v2524_v5, %v2524_v5 }
0x1de7   :  { %v2519_v7 = vadd.f32 %v2750_v25, %v2518_v13 }
0x1de9   :  { %v2529_v35 = vpack.c.bf16 %v2519_v7, %v2516_v6 }
0x1deb   :  { %3157 = vmatprep.mubr.msk.bf16.mxu1 %vm835_vm3, %v2529_v35 }
0x1dec   :  { %3158 = vmatmul.mubr.msk.bf16.vlgmr.msra.gmra.mrb[52].mxu1 %vm835_vm3, %v2530_v36 }
0x1ebf   :  { %v3159_v3 = vpop.f32.mrb[52].mxu1 }
0x1ec0   :  { %v2619_v12 = vadd.f32 %v3159_v3, %v2755_v8  ;;  %v2610_v14 = vpop.f32.mrb[53].mxu1 }
0x1ec1   :  { %v2611_v11 = vadd.f32 %v2755_v8, %v2610_v14  ;;  %v3160_v38 = vpop.f32.mrb[54].mxu1 }
0x1ec2   :  { %2626 = vst [vmem:[%s4212_s14 + $0x10] sm:$0x3] %v2619_v12  ;;  %v2613_v26 = vpop.f32.mrb[55].mxu1 }
0x1ec3   :  { %2624 = vst [vmem:[%s4212_s14] sm:$0xff] %v2611_v11  ;;  %v2614_v0 = vadd.f32 %v2755_v8, %v2613_v26 }
0x1ec5   :  { %2625 = vst [vmem:[%s4212_s14 + $0x8] sm:$0xff] %v2614_v0 }

</bundles_post_ra>
